<compile_context>
chip_gen: v5e
topology: v5e:2x2
jax: 0.10.0
libtpu: 0.0.40
codegen_flags: <defaults>
</compile_context>

<pallas_src>
import functools

import numpy as np
import jax
import jax.numpy as jnp
from jax import lax
from jax.experimental import pallas as pl
from jax.experimental.pallas import tpu as pltpu


# ------------------------------ fused FlowStep kernel -----------------------------
def _flowstep_kernel(x_ref, wf_ref, bf_ref, w1_ref, b1_ref, w2_ref, b2_ref,
                     w3_ref, b3_ref, mask_ref, z_ref, ls_ref, *, H, W, ch):
    P = H * W
    x = x_ref[...].astype(jnp.float32)                 # (C, P), channels on sublanes

    # --- ActNorm + invertible 1x1 conv (pre-folded in wrapper): y = Wf @ x + bf ---
    y = jnp.dot(wf_ref[...], x, preferred_element_type=jnp.float32) + bf_ref[...]
    z1 = y[:ch, :]                                     # (ch, P)
    z2 = y[ch:, :]

    masks = mask_ref[...]                              # (9, P) static 0/1 tap masks

    def conv3x3(a, w_flat, b):
        # im2col: 9 masked lane-rolls (XLU) stacked along sublanes -> one MXU matmul.
        pieces = []
        for k in range(9):
            dy, dx = k // 3 - 1, k % 3 - 1
            off = dy * W + dx
            shifted = a if off == 0 else pltpu.roll(a, (-off) % P, axis=1)
            pieces.append(shifted * masks[k:k + 1, :])
        col = jnp.concatenate(pieces, axis=0)          # (9*Cin, P)
        return jnp.dot(w_flat, col, preferred_element_type=jnp.float32) + b

    # --- affine-coupling NN: conv3x3 -> relu -> 1x1 conv -> relu -> conv3x3 -------
    h = jnp.maximum(conv3x3(z1, w1_ref[...], b1_ref[...]), 0.0)
    h = jnp.maximum(jnp.dot(w2_ref[...], h, preferred_element_type=jnp.float32)
                    + b2_ref[...], 0.0)
    h = conv3x3(h, w3_ref[...], b3_ref[...])           # (C, P)

    shift = h[:ch, :]
    e = jnp.exp(-(h[ch:, :] + 2.0))                    # scale = sigmoid(raw + 2)
    scale = pl.reciprocal(1.0 + e, approx=True)
    z2o = (z2 + shift) * scale

    # lane-dense full-block store of the flow output
    z_ref[...] = jnp.concatenate([z1, z2o], axis=0).astype(z_ref.dtype)
    # per-sample coupling logdet term, reduced in-kernel to a scalar
    ls_ref[...] = -jnp.sum(jnp.log(1.0 + e), keepdims=True)


# --------------------------------- wrapper ---------------------------------------
def flow_step_forward(x_nchw, params, logdet=None):
    N, C, H, W = x_nchw.shape
    P = H * W
    ch = C // 2
    F = params["w2"].shape[0]
    assert C % 2 == 0

    if logdet is None:
        logdet = jnp.zeros((N,), jnp.float32)

    # Fold ActNorm into the 1x1 conv (tiny, parameter-only work).
    s = jnp.exp(params["an_logs"])                      # (C,)
    wf = params["w_inv"] * s[None, :]                   # Wf[o,i] = W[o,i]*exp(logs[i])
    bf = wf @ params["an_bias"]                         # (C,)

    # logdet contributions that depend only on parameters (constant per sample)
    ld_const = (H * W) * (jnp.sum(params["an_logs"]) +
                          jnp.linalg.slogdet(params["w_inv"])[1])

    # Reshape weights for the channels-first (C, P) im2col matmuls.
    w1f = jnp.transpose(params["w1"].reshape(9, ch, F), (2, 0, 1)).reshape(F, 9 * ch)
    w3f = jnp.transpose(params["w3"].reshape(9, F, C), (2, 0, 1)).reshape(C, 9 * F)
    w2t = params["w2"].T

    # Static SAME-padding tap masks (host-side, compile-time constant).
    rr, cc = np.divmod(np.arange(P), W)
    masks_np = np.zeros((9, P), np.float32)
    for k in range(9):
        dy, dx = k // 3 - 1, k % 3 - 1
        masks_np[k] = ((cc + dx >= 0) & (cc + dx < W) &
                       (rr + dy >= 0) & (rr + dy < H)).astype(np.float32)
    masks = jnp.asarray(masks_np)

    x3 = x_nchw.reshape(N, C, P)                        # NCHW -> (N, C, P), no transpose

    z3, ls = pl.pallas_call(
        functools.partial(_flowstep_kernel, H=H, W=W, ch=ch),
        out_shape=(jax.ShapeDtypeStruct((N, C, P), jnp.float32),
                   jax.ShapeDtypeStruct((N, 1, 1), jnp.float32)),
        grid=(N,),
        in_specs=[pl.BlockSpec((None, C, P), lambda n: (n, 0, 0)),
                  pl.BlockSpec((C, C), lambda n: (0, 0)),
                  pl.BlockSpec((C, 1), lambda n: (0, 0)),
                  pl.BlockSpec((F, 9 * ch), lambda n: (0, 0)),
                  pl.BlockSpec((F, 1), lambda n: (0, 0)),
                  pl.BlockSpec((F, F), lambda n: (0, 0)),
                  pl.BlockSpec((F, 1), lambda n: (0, 0)),
                  pl.BlockSpec((C, 9 * F), lambda n: (0, 0)),
                  pl.BlockSpec((C, 1), lambda n: (0, 0)),
                  pl.BlockSpec((9, P), lambda n: (0, 0))],
        out_specs=(pl.BlockSpec((None, C, P), lambda n: (n, 0, 0)),
                   pl.BlockSpec((None, 1, 1), lambda n: (n, 0, 0))),
        compiler_params=pltpu.CompilerParams(dimension_semantics=("parallel",)),
    )(x3, wf, bf[:, None], w1f, params["b1"][:, None], w2t,
      params["b2"][:, None], w3f, params["b3"][:, None], masks)

    logdet = logdet + ld_const + ls[:, 0, 0]
    return z3.reshape(N, C, H, W), logdet


# ------------------------------ pure-JAX reference --------------------------------
def reference_forward(x, params, logdet=None):
    N, C, H, W = x.shape
    ch = C // 2
    if logdet is None:
        logdet = jnp.zeros((N,), jnp.float32)
    y = (x + params["an_bias"][None, :, None, None]) * jnp.exp(
        params["an_logs"][None, :, None, None])
    logdet = logdet + H * W * jnp.sum(params["an_logs"])
    y = jnp.einsum("oi,nihw->nohw", params["w_inv"], y,
                   precision=lax.Precision.HIGHEST)
    logdet = logdet + H * W * jnp.linalg.slogdet(params["w_inv"])[1]
    z1, z2 = y[:, :ch], y[:, ch:]
    hin = jnp.transpose(z1, (0, 2, 3, 1))
    h = lax.conv_general_dilated(hin, params["w1"], (1, 1), "SAME",
                                 dimension_numbers=("NHWC", "HWIO", "NHWC"),
                                 precision=lax.Precision.HIGHEST) + params["b1"]
    h = jnp.maximum(h, 0.0)
    h = jnp.einsum("nhwc,cf->nhwf", h, params["w2"],
                   precision=lax.Precision.HIGHEST) + params["b2"]
    h = jnp.maximum(h, 0.0)
    h = lax.conv_general_dilated(h, params["w3"], (1, 1), "SAME",
                                 dimension_numbers=("NHWC", "HWIO", "NHWC"),
                                 precision=lax.Precision.HIGHEST) + params["b3"]
    h = jnp.transpose(h, (0, 3, 1, 2))
    shift, raw = h[:, :ch], h[:, ch:]
    scale = 1.0 / (1.0 + jnp.exp(-(raw + 2.0)))
    z2o = (z2 + shift) * scale
    logdet = logdet + jnp.sum(jnp.log(scale), axis=(1, 2, 3))
    z = jnp.concatenate([z1, z2o], axis=1)
    return z, logdet


if __name__ == "__main__":
    key = jax.random.PRNGKey(0)
    kx, kw, k1, k2, k3 = jax.random.split(key, 5)
    N, C, H, W_, F = 2, 4, 16, 16, 32          # channel_dim=4, filter_size=32
    ch = C // 2
    x = jax.random.normal(kx, (N, C, H, W_), jnp.float32)

    q = jnp.linalg.qr(jax.random.normal(kw, (C, C), jnp.float32))[0]
    params = {
        # ActNorm (deterministic synthetic init; Glow's data-dependent init skipped)
        "an_bias": jnp.linspace(-0.2, 0.2, C).astype(jnp.float32),
        "an_logs": jnp.linspace(-0.1, 0.1, C).astype(jnp.float32),
        # invertible 1x1 conv weight: scaled orthogonal (non-trivial |det|)
        "w_inv": (q * jnp.linspace(0.8, 1.2, C)).astype(jnp.float32),
        # coupling NN (HWIO conv weights). Glow zero-inits the last conv; small
        # random values are used so the kernel compute is actually exercised.
        "w1": 0.1 * jax.random.normal(k1, (3, 3, ch, F), jnp.float32),
        "b1": 0.01 * jnp.arange(F, dtype=jnp.float32),
        "w2": 0.1 * jax.random.normal(k2, (F, F), jnp.float32),
        "b2": -0.01 * jnp.arange(F, dtype=jnp.float32),
        "w3": 0.1 * jax.random.normal(k3, (3, 3, F, C), jnp.float32),
        "b3": jnp.zeros((C,), jnp.float32),
    }

    z, logdet = jax.block_until_ready(flow_step_forward(x, params))

    z_ref, logdet_ref = reference_forward(x, params)
    np.testing.assert_allclose(np.asarray(z), np.asarray(z_ref),
                               rtol=2e-2, atol=2e-2)
    np.testing.assert_allclose(np.asarray(logdet), np.asarray(logdet_ref),
                               rtol=2e-2, atol=2e-2)
    print("KERNEL_OK")
</pallas_src>

<mosaic_0001>
module attributes {stable_mosaic.version = 11 : i64} {
  func.func @_flowstep_kernel(%arg0: i32, %arg1: memref<1x4x256xf32, #tpu.memory_space<vmem>>, %arg2: memref<4x4xf32, #tpu.memory_space<vmem>>, %arg3: memref<4x1xf32, #tpu.memory_space<vmem>>, %arg4: memref<32x18xf32, #tpu.memory_space<vmem>>, %arg5: memref<32x1xf32, #tpu.memory_space<vmem>>, %arg6: memref<32x32xf32, #tpu.memory_space<vmem>>, %arg7: memref<32x1xf32, #tpu.memory_space<vmem>>, %arg8: memref<4x288xf32, #tpu.memory_space<vmem>>, %arg9: memref<4x1xf32, #tpu.memory_space<vmem>>, %arg10: memref<9x256xf32, #tpu.memory_space<vmem>>, %arg11: memref<1x4x256xf32, #tpu.memory_space<vmem>>, %arg12: memref<1x1x1xf32, #tpu.memory_space<vmem>>) attributes {dimension_semantics = [#tpu.dimension_semantics<parallel>], iteration_bounds = array<i64: 2>, scalar_prefetch = 0 : i64, scratch_operands = 0 : i64, tpu.core_type = #tpu.core_type<tc>, window_params = [{transform_indices = @transform_0, window_bounds = array<i64: 1, 4, 256>}, {pipeline_mode = #tpu.pipeline_mode<synchronous>, transform_indices = @transform_1, window_bounds = array<i64: 4, 4>}, {pipeline_mode = #tpu.pipeline_mode<synchronous>, transform_indices = @transform_2, window_bounds = array<i64: 4, 1>}, {pipeline_mode = #tpu.pipeline_mode<synchronous>, transform_indices = @transform_3, window_bounds = array<i64: 32, 18>}, {pipeline_mode = #tpu.pipeline_mode<synchronous>, transform_indices = @transform_4, window_bounds = array<i64: 32, 1>}, {pipeline_mode = #tpu.pipeline_mode<synchronous>, transform_indices = @transform_5, window_bounds = array<i64: 32, 32>}, {pipeline_mode = #tpu.pipeline_mode<synchronous>, transform_indices = @transform_6, window_bounds = array<i64: 32, 1>}, {pipeline_mode = #tpu.pipeline_mode<synchronous>, transform_indices = @transform_7, window_bounds = array<i64: 4, 288>}, {pipeline_mode = #tpu.pipeline_mode<synchronous>, transform_indices = @transform_8, window_bounds = array<i64: 4, 1>}, {pipeline_mode = #tpu.pipeline_mode<synchronous>, transform_indices = @transform_9, window_bounds = array<i64: 9, 256>}, {transform_indices = @transform_10, window_bounds = array<i64: 1, 4, 256>}, {transform_indices = @transform_11, window_bounds = array<i64: 1, 1, 1>}]} {
    %c0 = arith.constant 0 : index
    %c0_0 = arith.constant 0 : index
    %c0_1 = arith.constant 0 : index
    %0 = vector.load %arg1[%c0, %c0_0, %c0_1] : memref<1x4x256xf32, #tpu.memory_space<vmem>>, vector<1x4x256xf32>
    %1 = vector.shape_cast %0 : vector<1x4x256xf32> to vector<4x256xf32>
    %c0_2 = arith.constant 0 : index
    %c0_3 = arith.constant 0 : index
    %2 = vector.load %arg2[%c0_2, %c0_3] : memref<4x4xf32, #tpu.memory_space<vmem>>, vector<4x4xf32>
    %cst = arith.constant dense<0.000000e+00> : vector<4x256xf32>
    %3 = tpu.matmul %2, %1, %cst {dimension_numbers = #tpu.dot_dimension_numbers<[1], [0], [0], [1], [0, 0, 1, 1], [], []>} : vector<4x4xf32>, vector<4x256xf32>, vector<4x256xf32> -> vector<4x256xf32>
    %c0_4 = arith.constant 0 : index
    %c0_5 = arith.constant 0 : index
    %4 = vector.load %arg3[%c0_4, %c0_5] : memref<4x1xf32, #tpu.memory_space<vmem>>, vector<4x1xf32>
    %5 = vector.broadcast %4 : vector<4x1xf32> to vector<4x256xf32>
    %6 = arith.addf %3, %5 : vector<4x256xf32>
    %7 = vector.extract_strided_slice %6 {offsets = [0, 0], sizes = [2, 256], strides = [1, 1]} : vector<4x256xf32> to vector<2x256xf32>
    %8 = vector.extract_strided_slice %6 {offsets = [2, 0], sizes = [2, 256], strides = [1, 1]} : vector<4x256xf32> to vector<2x256xf32>
    %c0_6 = arith.constant 0 : index
    %c0_7 = arith.constant 0 : index
    %9 = vector.load %arg10[%c0_6, %c0_7] : memref<9x256xf32, #tpu.memory_space<vmem>>, vector<9x256xf32>
    %c0_8 = arith.constant 0 : index
    %c0_9 = arith.constant 0 : index
    %10 = vector.load %arg4[%c0_8, %c0_9] : memref<32x18xf32, #tpu.memory_space<vmem>>, vector<32x18xf32>
    %c0_10 = arith.constant 0 : index
    %c0_11 = arith.constant 0 : index
    %11 = vector.load %arg5[%c0_10, %c0_11] : memref<32x1xf32, #tpu.memory_space<vmem>>, vector<32x1xf32>
    %c17_i32 = arith.constant 17 : i32
    %12 = tpu.dynamic_rotate %7 by %c17_i32 dim 1 : vector<2x256xf32>, i32 -> vector<2x256xf32>
    %13 = vector.extract_strided_slice %9 {offsets = [0, 0], sizes = [1, 256], strides = [1, 1]} : vector<9x256xf32> to vector<1x256xf32>
    %14 = vector.broadcast %13 : vector<1x256xf32> to vector<2x256xf32>
    %15 = arith.mulf %12, %14 : vector<2x256xf32>
    %c16_i32 = arith.constant 16 : i32
    %16 = tpu.dynamic_rotate %7 by %c16_i32 dim 1 : vector<2x256xf32>, i32 -> vector<2x256xf32>
    %17 = vector.extract_strided_slice %9 {offsets = [1, 0], sizes = [1, 256], strides = [1, 1]} : vector<9x256xf32> to vector<1x256xf32>
    %18 = vector.broadcast %17 : vector<1x256xf32> to vector<2x256xf32>
    %19 = arith.mulf %16, %18 : vector<2x256xf32>
    %c15_i32 = arith.constant 15 : i32
    %20 = tpu.dynamic_rotate %7 by %c15_i32 dim 1 : vector<2x256xf32>, i32 -> vector<2x256xf32>
    %21 = vector.extract_strided_slice %9 {offsets = [2, 0], sizes = [1, 256], strides = [1, 1]} : vector<9x256xf32> to vector<1x256xf32>
    %22 = vector.broadcast %21 : vector<1x256xf32> to vector<2x256xf32>
    %23 = arith.mulf %20, %22 : vector<2x256xf32>
    %c1_i32 = arith.constant 1 : i32
    %24 = tpu.dynamic_rotate %7 by %c1_i32 dim 1 : vector<2x256xf32>, i32 -> vector<2x256xf32>
    %25 = vector.extract_strided_slice %9 {offsets = [3, 0], sizes = [1, 256], strides = [1, 1]} : vector<9x256xf32> to vector<1x256xf32>
    %26 = vector.broadcast %25 : vector<1x256xf32> to vector<2x256xf32>
    %27 = arith.mulf %24, %26 : vector<2x256xf32>
    %28 = vector.extract_strided_slice %9 {offsets = [4, 0], sizes = [1, 256], strides = [1, 1]} : vector<9x256xf32> to vector<1x256xf32>
    %29 = vector.broadcast %28 : vector<1x256xf32> to vector<2x256xf32>
    %30 = arith.mulf %7, %29 : vector<2x256xf32>
    %c255_i32 = arith.constant 255 : i32
    %31 = tpu.dynamic_rotate %7 by %c255_i32 dim 1 : vector<2x256xf32>, i32 -> vector<2x256xf32>
    %32 = vector.extract_strided_slice %9 {offsets = [5, 0], sizes = [1, 256], strides = [1, 1]} : vector<9x256xf32> to vector<1x256xf32>
    %33 = vector.broadcast %32 : vector<1x256xf32> to vector<2x256xf32>
    %34 = arith.mulf %31, %33 : vector<2x256xf32>
    %c241_i32 = arith.constant 241 : i32
    %35 = tpu.dynamic_rotate %7 by %c241_i32 dim 1 : vector<2x256xf32>, i32 -> vector<2x256xf32>
    %36 = vector.extract_strided_slice %9 {offsets = [6, 0], sizes = [1, 256], strides = [1, 1]} : vector<9x256xf32> to vector<1x256xf32>
    %37 = vector.broadcast %36 : vector<1x256xf32> to vector<2x256xf32>
    %38 = arith.mulf %35, %37 : vector<2x256xf32>
    %c240_i32 = arith.constant 240 : i32
    %39 = tpu.dynamic_rotate %7 by %c240_i32 dim 1 : vector<2x256xf32>, i32 -> vector<2x256xf32>
    %40 = vector.extract_strided_slice %9 {offsets = [7, 0], sizes = [1, 256], strides = [1, 1]} : vector<9x256xf32> to vector<1x256xf32>
    %41 = vector.broadcast %40 : vector<1x256xf32> to vector<2x256xf32>
    %42 = arith.mulf %39, %41 : vector<2x256xf32>
    %c239_i32 = arith.constant 239 : i32
    %43 = tpu.dynamic_rotate %7 by %c239_i32 dim 1 : vector<2x256xf32>, i32 -> vector<2x256xf32>
    %44 = vector.extract_strided_slice %9 {offsets = [8, 0], sizes = [1, 256], strides = [1, 1]} : vector<9x256xf32> to vector<1x256xf32>
    %45 = vector.broadcast %44 : vector<1x256xf32> to vector<2x256xf32>
    %46 = arith.mulf %43, %45 : vector<2x256xf32>
    %47 = tpu.concatenate %15, %19, %23, %27, %30, %34, %38, %42, %46 in 0 : vector<2x256xf32>, vector<2x256xf32>, vector<2x256xf32>, vector<2x256xf32>, vector<2x256xf32>, vector<2x256xf32>, vector<2x256xf32>, vector<2x256xf32>, vector<2x256xf32> -> vector<18x256xf32>
    %cst_12 = arith.constant dense<0.000000e+00> : vector<32x256xf32>
    %48 = tpu.matmul %10, %47, %cst_12 {dimension_numbers = #tpu.dot_dimension_numbers<[1], [0], [0], [1], [0, 0, 1, 1], [], []>} : vector<32x18xf32>, vector<18x256xf32>, vector<32x256xf32> -> vector<32x256xf32>
    %49 = vector.broadcast %11 : vector<32x1xf32> to vector<32x256xf32>
    %50 = arith.addf %48, %49 : vector<32x256xf32>
    %cst_13 = arith.constant 0.000000e+00 : f32
    %51 = vector.broadcast %cst_13 : f32 to vector<32x256xf32>
    %52 = arith.maximumf %50, %51 : vector<32x256xf32>
    %c0_14 = arith.constant 0 : index
    %c0_15 = arith.constant 0 : index
    %53 = vector.load %arg6[%c0_14, %c0_15] : memref<32x32xf32, #tpu.memory_space<vmem>>, vector<32x32xf32>
    %cst_16 = arith.constant dense<0.000000e+00> : vector<32x256xf32>
    %54 = tpu.matmul %53, %52, %cst_16 {dimension_numbers = #tpu.dot_dimension_numbers<[1], [0], [0], [1], [0, 0, 1, 1], [], []>} : vector<32x32xf32>, vector<32x256xf32>, vector<32x256xf32> -> vector<32x256xf32>
    %c0_17 = arith.constant 0 : index
    %c0_18 = arith.constant 0 : index
    %55 = vector.load %arg7[%c0_17, %c0_18] : memref<32x1xf32, #tpu.memory_space<vmem>>, vector<32x1xf32>
    %56 = vector.broadcast %55 : vector<32x1xf32> to vector<32x256xf32>
    %57 = arith.addf %54, %56 : vector<32x256xf32>
    %cst_19 = arith.constant 0.000000e+00 : f32
    %58 = vector.broadcast %cst_19 : f32 to vector<32x256xf32>
    %59 = arith.maximumf %57, %58 : vector<32x256xf32>
    %c0_20 = arith.constant 0 : index
    %c0_21 = arith.constant 0 : index
    %60 = vector.load %arg8[%c0_20, %c0_21] : memref<4x288xf32, #tpu.memory_space<vmem>>, vector<4x288xf32>
    %c0_22 = arith.constant 0 : index
    %c0_23 = arith.constant 0 : index
    %61 = vector.load %arg9[%c0_22, %c0_23] : memref<4x1xf32, #tpu.memory_space<vmem>>, vector<4x1xf32>
    %c17_i32_24 = arith.constant 17 : i32
    %62 = tpu.dynamic_rotate %59 by %c17_i32_24 dim 1 : vector<32x256xf32>, i32 -> vector<32x256xf32>
    %63 = vector.extract_strided_slice %9 {offsets = [0, 0], sizes = [1, 256], strides = [1, 1]} : vector<9x256xf32> to vector<1x256xf32>
    %64 = vector.broadcast %63 : vector<1x256xf32> to vector<32x256xf32>
    %65 = arith.mulf %62, %64 : vector<32x256xf32>
    %c16_i32_25 = arith.constant 16 : i32
    %66 = tpu.dynamic_rotate %59 by %c16_i32_25 dim 1 : vector<32x256xf32>, i32 -> vector<32x256xf32>
    %67 = vector.extract_strided_slice %9 {offsets = [1, 0], sizes = [1, 256], strides = [1, 1]} : vector<9x256xf32> to vector<1x256xf32>
    %68 = vector.broadcast %67 : vector<1x256xf32> to vector<32x256xf32>
    %69 = arith.mulf %66, %68 : vector<32x256xf32>
    %c15_i32_26 = arith.constant 15 : i32
    %70 = tpu.dynamic_rotate %59 by %c15_i32_26 dim 1 : vector<32x256xf32>, i32 -> vector<32x256xf32>
    %71 = vector.extract_strided_slice %9 {offsets = [2, 0], sizes = [1, 256], strides = [1, 1]} : vector<9x256xf32> to vector<1x256xf32>
    %72 = vector.broadcast %71 : vector<1x256xf32> to vector<32x256xf32>
    %73 = arith.mulf %70, %72 : vector<32x256xf32>
    %c1_i32_27 = arith.constant 1 : i32
    %74 = tpu.dynamic_rotate %59 by %c1_i32_27 dim 1 : vector<32x256xf32>, i32 -> vector<32x256xf32>
    %75 = vector.extract_strided_slice %9 {offsets = [3, 0], sizes = [1, 256], strides = [1, 1]} : vector<9x256xf32> to vector<1x256xf32>
    %76 = vector.broadcast %75 : vector<1x256xf32> to vector<32x256xf32>
    %77 = arith.mulf %74, %76 : vector<32x256xf32>
    %78 = vector.extract_strided_slice %9 {offsets = [4, 0], sizes = [1, 256], strides = [1, 1]} : vector<9x256xf32> to vector<1x256xf32>
    %79 = vector.broadcast %78 : vector<1x256xf32> to vector<32x256xf32>
    %80 = arith.mulf %59, %79 : vector<32x256xf32>
    %c255_i32_28 = arith.constant 255 : i32
    %81 = tpu.dynamic_rotate %59 by %c255_i32_28 dim 1 : vector<32x256xf32>, i32 -> vector<32x256xf32>
    %82 = vector.extract_strided_slice %9 {offsets = [5, 0], sizes = [1, 256], strides = [1, 1]} : vector<9x256xf32> to vector<1x256xf32>
    %83 = vector.broadcast %82 : vector<1x256xf32> to vector<32x256xf32>
    %84 = arith.mulf %81, %83 : vector<32x256xf32>
    %c241_i32_29 = arith.constant 241 : i32
    %85 = tpu.dynamic_rotate %59 by %c241_i32_29 dim 1 : vector<32x256xf32>, i32 -> vector<32x256xf32>
    %86 = vector.extract_strided_slice %9 {offsets = [6, 0], sizes = [1, 256], strides = [1, 1]} : vector<9x256xf32> to vector<1x256xf32>
    %87 = vector.broadcast %86 : vector<1x256xf32> to vector<32x256xf32>
    %88 = arith.mulf %85, %87 : vector<32x256xf32>
    %c240_i32_30 = arith.constant 240 : i32
    %89 = tpu.dynamic_rotate %59 by %c240_i32_30 dim 1 : vector<32x256xf32>, i32 -> vector<32x256xf32>
    %90 = vector.extract_strided_slice %9 {offsets = [7, 0], sizes = [1, 256], strides = [1, 1]} : vector<9x256xf32> to vector<1x256xf32>
    %91 = vector.broadcast %90 : vector<1x256xf32> to vector<32x256xf32>
    %92 = arith.mulf %89, %91 : vector<32x256xf32>
    %c239_i32_31 = arith.constant 239 : i32
    %93 = tpu.dynamic_rotate %59 by %c239_i32_31 dim 1 : vector<32x256xf32>, i32 -> vector<32x256xf32>
    %94 = vector.extract_strided_slice %9 {offsets = [8, 0], sizes = [1, 256], strides = [1, 1]} : vector<9x256xf32> to vector<1x256xf32>
    %95 = vector.broadcast %94 : vector<1x256xf32> to vector<32x256xf32>
    %96 = arith.mulf %93, %95 : vector<32x256xf32>
    %97 = tpu.concatenate %65, %69, %73, %77, %80, %84, %88, %92, %96 in 0 : vector<32x256xf32>, vector<32x256xf32>, vector<32x256xf32>, vector<32x256xf32>, vector<32x256xf32>, vector<32x256xf32>, vector<32x256xf32>, vector<32x256xf32>, vector<32x256xf32> -> vector<288x256xf32>
    %cst_32 = arith.constant dense<0.000000e+00> : vector<4x256xf32>
    %98 = tpu.matmul %60, %97, %cst_32 {dimension_numbers = #tpu.dot_dimension_numbers<[1], [0], [0], [1], [0, 0, 1, 1], [], []>} : vector<4x288xf32>, vector<288x256xf32>, vector<4x256xf32> -> vector<4x256xf32>
    %99 = vector.broadcast %61 : vector<4x1xf32> to vector<4x256xf32>
    %100 = arith.addf %98, %99 : vector<4x256xf32>
    %101 = vector.extract_strided_slice %100 {offsets = [0, 0], sizes = [2, 256], strides = [1, 1]} : vector<4x256xf32> to vector<2x256xf32>
    %102 = vector.extract_strided_slice %100 {offsets = [2, 0], sizes = [2, 256], strides = [1, 1]} : vector<4x256xf32> to vector<2x256xf32>
    %cst_33 = arith.constant 2.000000e+00 : f32
    %103 = vector.broadcast %cst_33 : f32 to vector<2x256xf32>
    %104 = arith.addf %102, %103 : vector<2x256xf32>
    %cst_34 = arith.constant 0.000000e+00 : f32
    %105 = vector.broadcast %cst_34 : f32 to vector<2x256xf32>
    %106 = arith.subf %105, %104 : vector<2x256xf32>
    %107 = math.exp %106 : vector<2x256xf32>
    %cst_35 = arith.constant 1.000000e+00 : f32
    %108 = vector.broadcast %cst_35 : f32 to vector<2x256xf32>
    %109 = arith.addf %108, %107 : vector<2x256xf32>
    %110 = tpu.reciprocal %109 {approx = true} : vector<2x256xf32> -> vector<2x256xf32>
    %111 = arith.addf %8, %101 : vector<2x256xf32>
    %112 = arith.mulf %111, %110 : vector<2x256xf32>
    %113 = tpu.concatenate %7, %112 in 0 : vector<2x256xf32>, vector<2x256xf32> -> vector<4x256xf32>
    %c0_36 = arith.constant 0 : index
    %c0_37 = arith.constant 0 : index
    %c0_38 = arith.constant 0 : index
    %114 = vector.load %arg11[%c0_36, %c0_37, %c0_38] : memref<1x4x256xf32, #tpu.memory_space<vmem>>, vector<1x4x256xf32>
    %115 = vector.shape_cast %114 : vector<1x4x256xf32> to vector<4x256xf32>
    %116 = vector.shape_cast %113 : vector<4x256xf32> to vector<1x4x256xf32>
    tpu.vector_store %arg11[%c0_36, %c0_37, %c0_38], %116 {strides = array<i32>} : memref<1x4x256xf32, #tpu.memory_space<vmem>>, vector<1x4x256xf32>,
    %cst_39 = arith.constant 1.000000e+00 : f32
    %117 = vector.broadcast %cst_39 : f32 to vector<2x256xf32>
    %118 = arith.addf %117, %107 : vector<2x256xf32>
    %119 = math.log %118 : vector<2x256xf32>
    %120 = vector.shape_cast %119 : vector<2x256xf32> to vector<1x2x256xf32>
    %cst_40 = arith.constant dense<0.000000e+00> : vector<1xf32>
    %121 = vector.multi_reduction <add>, %120, %cst_40 [1, 2] : vector<1x2x256xf32> to vector<1xf32>
    %122 = vector.shape_cast %121 : vector<1xf32> to vector<1x1x1xf32>
    %123 = vector.extract %122[0, 0, 0] : f32 from vector<1x1x1xf32>
    %124 = vector.broadcast %123 : f32 to vector<1x1xf32>
    %cst_41 = arith.constant 0.000000e+00 : f32
    %125 = vector.broadcast %cst_41 : f32 to vector<1x1xf32>
    %126 = arith.subf %125, %124 : vector<1x1xf32>
    %c0_42 = arith.constant 0 : index
    %c0_43 = arith.constant 0 : index
    %c0_44 = arith.constant 0 : index
    %127 = vector.load %arg12[%c0_42, %c0_43, %c0_44] : memref<1x1x1xf32, #tpu.memory_space<vmem>>, vector<1x1x1xf32>
    %128 = vector.shape_cast %127 : vector<1x1x1xf32> to vector<1x1xf32>
    %129 = vector.shape_cast %126 : vector<1x1xf32> to vector<1x1x1xf32>
    tpu.vector_store %arg12[%c0_42, %c0_43, %c0_44], %129 {strides = array<i32>} : memref<1x1x1xf32, #tpu.memory_space<vmem>>, vector<1x1x1xf32>,
    return
  }
  func.func @transform_0(%arg0: i32) -> (i32, i32, i32) {
    %c0_i32 = arith.constant 0 : i32
    %c0_i32_0 = arith.constant 0 : i32
    %c0_i32_1 = arith.constant 0 : i32
    return %arg0, %c0_i32, %c0_i32_0 : i32, i32, i32
  }
  func.func @transform_1(%arg0: i32) -> (i32, i32) {
    %c0_i32 = arith.constant 0 : i32
    %c0_i32_0 = arith.constant 0 : i32
    %c0_i32_1 = arith.constant 0 : i32
    return %c0_i32, %c0_i32_0 : i32, i32
  }
  func.func @transform_2(%arg0: i32) -> (i32, i32) {
    %c0_i32 = arith.constant 0 : i32
    %c0_i32_0 = arith.constant 0 : i32
    %c0_i32_1 = arith.constant 0 : i32
    return %c0_i32, %c0_i32_0 : i32, i32
  }
  func.func @transform_3(%arg0: i32) -> (i32, i32) {
    %c0_i32 = arith.constant 0 : i32
    %c0_i32_0 = arith.constant 0 : i32
    %c0_i32_1 = arith.constant 0 : i32
    return %c0_i32, %c0_i32_0 : i32, i32
  }
  func.func @transform_4(%arg0: i32) -> (i32, i32) {
    %c0_i32 = arith.constant 0 : i32
    %c0_i32_0 = arith.constant 0 : i32
    %c0_i32_1 = arith.constant 0 : i32
    return %c0_i32, %c0_i32_0 : i32, i32
  }
  func.func @transform_5(%arg0: i32) -> (i32, i32) {
    %c0_i32 = arith.constant 0 : i32
    %c0_i32_0 = arith.constant 0 : i32
    %c0_i32_1 = arith.constant 0 : i32
    return %c0_i32, %c0_i32_0 : i32, i32
  }
  func.func @transform_6(%arg0: i32) -> (i32, i32) {
    %c0_i32 = arith.constant 0 : i32
    %c0_i32_0 = arith.constant 0 : i32
    %c0_i32_1 = arith.constant 0 : i32
    return %c0_i32, %c0_i32_0 : i32, i32
  }
  func.func @transform_7(%arg0: i32) -> (i32, i32) {
    %c0_i32 = arith.constant 0 : i32
    %c0_i32_0 = arith.constant 0 : i32
    %c0_i32_1 = arith.constant 0 : i32
    return %c0_i32, %c0_i32_0 : i32, i32
  }
  func.func @transform_8(%arg0: i32) -> (i32, i32) {
    %c0_i32 = arith.constant 0 : i32
    %c0_i32_0 = arith.constant 0 : i32
    %c0_i32_1 = arith.constant 0 : i32
    return %c0_i32, %c0_i32_0 : i32, i32
  }
  func.func @transform_9(%arg0: i32) -> (i32, i32) {
    %c0_i32 = arith.constant 0 : i32
    %c0_i32_0 = arith.constant 0 : i32
    %c0_i32_1 = arith.constant 0 : i32
    return %c0_i32, %c0_i32_0 : i32, i32
  }
  func.func @transform_10(%arg0: i32) -> (i32, i32, i32) {
    %c0_i32 = arith.constant 0 : i32
    %c0_i32_0 = arith.constant 0 : i32
    %c0_i32_1 = arith.constant 0 : i32
    return %arg0, %c0_i32, %c0_i32_0 : i32, i32, i32
  }
  func.func @transform_11(%arg0: i32) -> (i32, i32, i32) {
    %c0_i32 = arith.constant 0 : i32
    %c0_i32_0 = arith.constant 0 : i32
    %c0_i32_1 = arith.constant 0 : i32
    return %arg0, %c0_i32, %c0_i32_0 : i32, i32, i32
  }
}

</mosaic_0001>

<bundles_post_ra>
// kernel: tpu_custom_call.1
= control target key start
LH: loop header
LB: loop body
LE: loop exit
PB: predicated region body
PF: predicated region fallthrough
CT: control target
= control target key end

     0   :  { %s2491_s0 = inlined_call_operand.vmem [shape: f32[2,4,256], index: 0, kind: input, shape index: {}]   ;;  %s2492_s1 = inlined_call_operand.vmem [shape: f32[4,4], index: 1, kind: input, shape index: {}]   ;;  %s2493_s2 = inlined_call_operand.vmem [shape: f32[4,1], index: 2, kind: input, shape index: {}]   ;;  %s2494_s3 = inlined_call_operand.vmem [shape: f32[32,18], index: 3, kind: input, shape index: {}]   ;;  %s2495_s4 = inlined_call_operand.vmem [shape: f32[32,1], index: 4, kind: input, shape index: {}]   ;;  %s2496_s5 = inlined_call_operand.vmem [shape: f32[32,32], index: 5, kind: input, shape index: {}]   ;;  %s2497_s6 = inlined_call_operand.vmem [shape: f32[32,1], index: 6, kind: input, shape index: {}]   ;;  %s2498_s7 = inlined_call_operand.vmem [shape: f32[4,288], index: 7, kind: input, shape index: {}]   ;;  %s2499_s8 = inlined_call_operand.vmem [shape: f32[4,1], index: 8, kind: input, shape index: {}]   ;;  %s2500_s9 = inlined_call_operand.vmem [shape: f32[9,256], index: 9, kind: input, shape index: {}]   ;;  %s2501_s10 = inlined_call_operand.hbm [shape: f32[2,4,256], index: 10, kind: output, shape index: {0}]   ;;  %s2502_s11 = inlined_call_operand.vmem [shape: f32[2,1,1], index: 11, kind: output, shape index: {1}]  }
   0x1   :  { %2535 = sst [smem:[#allocation26_spill]] %s2491_s0 }
   0x2   :  { %2536 = sst [smem:[#allocation27_spill]] %s2492_s1 }
   0x3   :  { %2537 = sst [smem:[#allocation28_spill]] %s2493_s2 }
   0x4   :  { %2538 = sst [smem:[#allocation29_spill]] %s2494_s3 }
   0x5   :  { %2539 = sst [smem:[#allocation30_spill]] %s2495_s4 }
   0x6   :  { %17 = vsyncpa [#allocation3], 0 }
   0x7   :  { %19 = vsyncpa [#allocation3 + $0x1], 0  ;;  %s1624_s17 = smov 0   ;;  %s1626_s18 = smov 0  }
   0x8   :  { %s1628_s19 = smov 0   ;;  %s1630_s20 = smov 0  }
   0x9 LB: > { %s1645_s21 = sadd.s32 4294967295, %s1553_s20   ;;  %s1384_s22 = sadd.s32 4294967294, %s1553_s20   ;;  %s1553_s20 = sphi %s1630_s20, %s2599_s20   ;;  %s1549_s19 = sphi %s1628_s19, %s2598_s19   ;;  %s1545_s18 = sphi %s1626_s18, %s2597_s18   ;;  %s1541_s17 = sphi %s1624_s17, %s2596_s17  }
   0xa   : > { %s1649_s23 = sadd.s32 1, %s1553_s20   ;;  %s247_s24 = sadd.s32 1, %s1549_s19 }
   0xb   : > { %s244_s25 = ssub.s32 %s1553_s20, %s1649_s23  ;;  %p257_p0 = scmp.ne.s32.totalorder %s1549_s19, %s1545_s18 }
   0xc   : > { %p245_p1 = scmp.eq.s32.totalorder %s244_s25, 0  ;;  %p258_p2 = scmp.eq.s32.totalorder %s1645_s21, 1 }
   0xd   : > { %p263_p3 = scmp.ne.s32.totalorder %s1545_s18, %s1541_s17  ;;  %p264_p4 = scmp.eq.s32.totalorder %s1384_s22, 1 }
   0xe   : > { %s1660_s26 = scalar_select %p245_p1, %s1549_s19, %s247_s24  }
   0xf   : > { %p1662_p5 = por %p258_p2, %p257_p0  ;;  %p1666_p6 = por %p264_p4, %p263_p3 }
  0x10   : > { %p1387_p7 = scmp.ge.s32.totalorder %s1553_s20, 1  ;;  %p343_p8 = scmp.lt.s32.totalorder %s1553_s20, 3 }
  0x12   : > { %p344_p9 = pnand %p1387_p7, %p343_p8 }
  0x14   : > { %347 = sbr.rel (%p344_p9) target bundleno = 1266 (0x4f2), region = 60 }
  0x19   : > { %p386_p10 = scmp.lt.s32.totalorder %s1645_s21, 1  ;;  %s2542_s2 = sld [smem:[#allocation28_spill]]  ;;  %v1555_v1 = vmov 0   ;;  %vm410_vm0 = vcmask 1043456   ;;  %v823_v3 = vld [vmem:[%s2498_s7] sm:$0xff]  ;;  %vm406_vm1 = vcmask 31744   ;;  %v471_v18 = vlaneseq }
  0x1a   : > { %1472 = vset.pattern.permute.xlu0 %v1555_v1  ;;  %1474 = vset.pattern.permute.xlu1 %v1555_v1  ;;  %s2543_s0 = sld [smem:[#allocation26_spill]]  ;;  %s2503_s30 = smov 16   ;;  %v723_v13 = vld [vmem:[%s2497_s6 + $0x18] sm:$0xff]  ;;  %v720_v14 = vld [vmem:[%s2497_s6] sm:$0xff]  ;;  %v1475_v22 = vld [vmem:[%s2500_s9 + $0x10] ss:$0 sm:$0xff] }
  0x1b   : > { %s1677_s12 = scalar_select %p386_p10, %s1645_s21, 1  ;;  %1473 = vset.pattern.permute.xlu2 %v1555_v1  ;;  %v1740_v21 = vand.u32 127, %v471_v18  ;;  %v1749_v23 = vld [vmem:[%s2500_s9 + $0x18] ss:$0 sm:$0xff]  ;;  %vm597_vm3 = vcmask 1041408   ;;  %v1763_v31 = vld [vmem:[%s2500_s9] sm:$0xff] }
  0x1c   : > { %s2544_s1 = sld [smem:[#allocation27_spill]]  ;;  %s2507_s14 = smov 127   ;;  %2548 = vst [vmem:[#allocation7_spill] sm:$0xff] %v1749_v23  ;;  %v1768_v32 = vld [vmem:[%s2500_s9 + $0x8] sm:$0xff]  ;;  %v1772_v33 = vperm.slane %v1763_v31, 5  ;;  %v1783_v39 = vperm.slane %v1763_v31, 6 }
  0x1d   : > { %s1420_s13 = sshll.u32 %s1677_s12, 3  ;;  %s2505_s15 = smov 111   ;;  %vm554_vm2 = vcmp.lt.s32.totalorder %v1740_v21, 111  ;;  %vm521_vm4 = vcmp.lt.s32.totalorder %v1740_v21, 127  ;;  %v1775_v34 = vperm.slane %v1768_v32, 5  ;;  %vm532_vm5 = vcmp.lt.s32.totalorder %v1740_v21, 113 }
  0x1e   : > { %s2509_s22 = smov 15   ;;  %s2513_s24 = smov 17   ;;  %v1786_v40 = vperm.slane %v1768_v32, 6  ;;  %v1795_v45 = vperm.slane %v1763_v31, 4  ;;  %v1798_v46 = vperm.slane %v1768_v32, 4  ;;  %vm543_vm6 = vcmp.lt.s32.totalorder %v1740_v21, 112 }
  0x1f   : > { %v396_v0 = vld [vmem:[%s2542_s2] sm:$0xf]  ;;  %s1563_s25 = smov 1   ;;  %s2547_s4 = sld [smem:[#allocation30_spill]]  ;;  %v1804_v51 = vperm.slane %v1763_v31, 7  ;;  %v1807_v52 = vperm.slane %v1768_v32, 7 }
  0x20   : > { %399 = vperm.xlu0 %1472, %v396_v0   ;;  %s390_s16 = scalar_lea.vmem %s2543_s0, %s1420_s13  ;;  %s2511_s13 = smov 113   ;;  %vm602_vm7 = vcmask 1045504   ;;  %vm484_vm8 = vcmp.lt.s32.totalorder %v1740_v21, 16  ;;  %vm473_vm9 = vcmp.lt.s32.totalorder %v1740_v21, 17  ;;  %vm495_vm10 = vcmp.lt.s32.totalorder %v1740_v21, 15 }
  0x21   : > { %v394_v2 = vld [vmem:[%s390_s16] sm:$0xff]  ;;  %s2515_s16 = smov 112   ;;  %v1849_v18 = vperm.slane %v1763_v31, 2  ;;  %vm506_vm11 = vcmp.lt.s32.totalorder %v1740_v21, 1  ;;  %s2551_s3 = sld [smem:[#allocation29_spill]]  ;;  %vm631_vm12 = vcmask 146432  }
  0x22   : > { %403 = vst [vmem:[#allocation1] ss:$2 sm:$0xff] %v394_v2  ;;  %v395_v4 = vld [vmem:[%s2544_s1] sm:$0xf]  ;;  %vm744_vm13 = vcmask 261120  }
  0x25   : > { %v465_v12 = vld [vmem:[%s2547_s4 + $0x10] sm:$0xff] }
  0x29   : > { %v404_v5 = vld.sshfl [vmem:[#allocation1] sm:$0xff pattern:$0x75316420]  ;;  %v405_v6 = vld.sshfl [vmem:[#allocation1 + $0x8] sm:$0xff pattern:$0x75316420] }
  0x2a   : > { %1391 = vmatpush.msk.msra.mxu2 %vm410_vm0, %v404_v5  ;;  %1393 = vmatpush.msk.msra.mxu1 %vm410_vm0, %v405_v6  ;;  %1097 = vst [vmem:[#allocation1] ss:$2 sm:$0xff] %v823_v3 }
  0x2b   : > { %1392 = vmatmul.msk.f32.vlgmr.msra.gmra.mxu2 %vm406_vm1, %v395_v4  ;;  %1394 = vmatmul.msk.f32.vlgmr.msra.gmra.mxu1 %vm406_vm1, %v395_v4 }
  0x92   : > { %v400_v7 = vpop.permute.xlu0 %399 }
  0xa8   : > { %v452_v8 = vpop.f32.mrf.mxu1 }
  0xa9   : > { %v1691_v9 = vadd.f32 %v452_v8, %v400_v7  ;;  %v1830_v8 = vperm.slane %v1768_v32, 1 }
  0xab   : > { %2545 = vst [vmem:[#allocation5_spill] sm:$0xff] %v1691_v9  ;;  %482 = vrot.lane.b32.xlu0 %v1691_v9, %s2503_s30  ;;  %530 = vrot.lane.b32.xlu2 %v1691_v9, %s2511_s13  ;;  %v516_v55 = vmul.f32 %v1798_v46, %v1691_v9 }
  0xac   : > { %519 = vrot.lane.b32.xlu1 %v1691_v9, %s2507_s14 }
  0xae   : > { %v432_v10 = vpop.f32.mrf.mxu2 }
  0xaf   : > { %v1705_v11 = vadd.f32 %v432_v10, %v400_v7  ;;  %v1827_v7 = vperm.slane %v1763_v31, 1 }
  0xb1   : > { %2546 = vst [vmem:[#allocation6_spill] sm:$0xff] %v1705_v11  ;;  %v515_v54 = vmul.f32 %v1795_v45, %v1705_v11 }
  0xb3   : > { %552 = vrot.lane.b32.xlu0 %v1691_v9, %s2505_s15  ;;  %541 = vrot.lane.b32.xlu2 %v1691_v9, %s2515_s16 }
  0xb4   : > { %493 = vrot.lane.b32.xlu1 %v1691_v9, %s2509_s22 }
  0xbb   : > { %480 = vrot.lane.b32.xlu2 %v1705_v11, %s2503_s30  ;;  %517 = vrot.lane.b32.xlu0 %v1705_v11, %s2507_s14  ;;  %s2556_s30 = smov 15   ;;  %s2557_s14 = smov 127  }
  0xbc   : > { %528 = vrot.lane.b32.xlu1 %v1705_v11, %s2511_s13  ;;  %s2560_s13 = smov 17  }
  0xc3   : > { %550 = vrot.lane.b32.xlu2 %v1705_v11, %s2505_s15  ;;  %491 = vrot.lane.b32.xlu0 %v1705_v11, %s2509_s22  ;;  %s2559_s15 = smov 16   ;;  %s2563_s22 = smov 111  }
  0xc4   : > { %539 = vrot.lane.b32.xlu1 %v1705_v11, %s2515_s16  ;;  %s2554_s16 = smov 112  }
  0xcb   : > { %469 = vrot.lane.b32.xlu2 %v1691_v9, %s2513_s24  ;;  %502 = vrot.lane.b32.xlu0 %v1705_v11, %s1563_s25 }
  0xcc   : > { %467 = vrot.lane.b32.xlu1 %v1705_v11, %s2513_s24  ;;  %s2555_s24 = smov 113  }
  0xd3   : > { %623 = vperm.xlu0 %1472, %v465_v12  }
  0xd4   : > { %504 = vrot.lane.b32.xlu1 %v1691_v9, %s1563_s25 }
  0xdb   : > { %741 = vperm.xlu0 %1472, %v723_v13  }
  0xe3   : > { %726 = vperm.xlu0 %1472, %v720_v14  }
 0x105   : > { %v531_v15 = vpop.permute.xlu2 %530 }
 0x10d   : > { %v542_v16 = vpop.permute.xlu2 %541 }
 0x115   : > { %v1736_v17 = vpop.permute.xlu2 %480 }
 0x11d   : > { %v1738_v19 = vpop.permute.xlu0 %482  ;;  %v551_v24 = vpop.permute.xlu2 %550 }
 0x11e   : > { %v520_v20 = vpop.permute.xlu1 %519  ;;  %v485_v12 = vsel %vm484_vm8, %v1736_v17, %v1738_v19  ;;  %v486_v13 = vsel %vm484_vm8, %v1738_v19, %v1736_v17 }
 0x11f   : > { %v489_v19 = vmul.f32 %v1827_v7, %v486_v13 }
 0x125   : > { %v553_v25 = vpop.permute.xlu0 %552  ;;  %v470_v14 = vpop.permute.xlu2 %469 }
 0x126   : > { %v555_v26 = vsel %vm554_vm2, %v551_v24, %v553_v25  ;;  %v556_v27 = vsel %vm554_vm2, %v553_v25, %v551_v24  ;;  %v1755_v28 = vpop.permute.xlu1 %493  ;;  %v490_v24 = vmul.f32 %v1830_v8, %v485_v12 }
 0x127   : > { %v559_v29 = vmul.f32 %v1475_v22, %v555_v26  ;;  %v560_v30 = vmul.f32 %v1749_v23, %v556_v27 }
 0x129   : > { %1395 = vmatpush.msk.msrb.mxu2 %vm597_vm3, %v559_v29  ;;  %1400 = vmatpush.msk.msra.mxu3 %vm597_vm3, %v560_v30  ;;  %v1870_v30 = vperm.slane %v1763_v31, 3 }
 0x12d   : > { %v518_v35 = vpop.permute.xlu0 %517 }
 0x12e   : > { %v529_v36 = vpop.permute.xlu1 %528  ;;  %v522_v37 = vsel %vm521_vm4, %v518_v35, %v520_v20  ;;  %v523_v38 = vsel %vm521_vm4, %v520_v20, %v518_v35  ;;  %v1852_v20 = vperm.slane %v1768_v32, 2  ;;  %v1873_v35 = vperm.slane %v1768_v32, 3 }
 0x12f   : > { %v533_v41 = vsel %vm532_vm5, %v529_v36, %v531_v15  ;;  %v534_v42 = vsel %vm532_vm5, %v531_v15, %v529_v36  ;;  %v526_v43 = vmul.f32 %v1772_v33, %v522_v37  ;;  %v527_v44 = vmul.f32 %v1775_v34, %v523_v38 }
 0x130   : > { %v537_v47 = vmul.f32 %v1783_v39, %v533_v41  ;;  %v538_v48 = vmul.f32 %v1786_v40, %v534_v42  ;;  %v1843_v15 = vperm.slane %v1763_v31, 0  ;;  %v563_v38 = vrot.slane %v489_v19, 6  ;;  %v466_v31 = vld [vmem:[%s2547_s4 + $0x18] sm:$0xff] }
 0x131   : > { %v581_v49 = vrot.slane %v526_v43, 6  ;;  %v582_v50 = vrot.slane %v527_v44, 6  ;;  %v564_v41 = vrot.slane %v490_v24, 6  ;;  %v464_v43 = vld [vmem:[%s2547_s4 + $0x8] sm:$0xff]  ;;  %628 = vperm.xlu2 %1473, %v466_v31  }
 0x132   : > { %v587_v56 = vrot.slane %v537_v47, 4  ;;  %v588_v57 = vrot.slane %v538_v48, 4  ;;  %2549 = vst [vmem:[#allocation8_spill] sm:$0xff] %v1843_v15  ;;  %618 = vperm.xlu1 %1474, %v464_v43  }
 0x133   : > { %v605_v62 = vsel %vm597_vm3, %v515_v54, %v581_v49  ;;  %v606_v63 = vsel %vm597_vm3, %v516_v55, %v582_v50 }
 0x134   : > { %v607_v2 = vsel %vm410_vm0, %v605_v62, %v587_v56  ;;  %v608_v3 = vsel %vm410_vm0, %v606_v63, %v588_v57  ;;  %v463_v62 = vld [vmem:[%s2547_s4] sm:$0xff]  ;;  %v722_v63 = vld [vmem:[%s2497_s6 + $0x10] sm:$0xff] }
 0x135   : > { %v492_v4 = vpop.permute.xlu0 %491 }
 0x136   : > { %v540_v53 = vpop.permute.xlu1 %539  ;;  %v496_v25 = vsel %vm495_vm10, %v492_v4, %v1755_v28  ;;  %v497_v26 = vsel %vm495_vm10, %v1755_v28, %v492_v4 }
 0x137   : > { %v544_v58 = vsel %vm543_vm6, %v540_v53, %v542_v16  ;;  %v545_v59 = vsel %vm543_vm6, %v542_v16, %v540_v53  ;;  %v1846_v16 = vperm.slane %v1768_v32, 0  ;;  %v500_v36 = vmul.f32 %v1849_v18, %v497_v26 }
 0x138   : > { %v548_v60 = vmul.f32 %v1804_v51, %v544_v58  ;;  %v549_v61 = vmul.f32 %v1807_v52, %v545_v59  ;;  %v501_v37 = vmul.f32 %v1852_v20, %v496_v25  ;;  %v459_v59 = vld [vmem:[%s2551_s3] sm:$0xff] }
 0x139   : > { %2550 = vst [vmem:[#allocation9_spill] sm:$0xff] %v1846_v16  ;;  %v569_v53 = vrot.slane %v500_v36, 4  ;;  %613 = vperm.xlu2 %1473, %v463_v62  }
 0x13a   : > { %v593_v0 = vrot.slane %v548_v60, 2  ;;  %v594_v1 = vrot.slane %v549_v61, 2  ;;  %v570_v54 = vrot.slane %v501_v37, 4  ;;  %736 = vperm.xlu1 %1474, %v722_v63  }
 0x13c   : > { %v609_v5 = vsel %vm602_vm7, %v607_v2, %v593_v0  ;;  %v610_v6 = vsel %vm602_vm7, %v608_v3, %v594_v1  ;;  %v460_v0 = vld [vmem:[%s2551_s3 + $0x8] sm:$0xff]  ;;  %v461_v2 = vld [vmem:[%s2551_s3 + $0x10] sm:$0xff]  ;;  %v462_v3 = vld [vmem:[%s2551_s3 + $0x18] sm:$0xff] }
 0x13d   : > { %664 = vmatpush.msrb.mxu2 %v609_v5  ;;  %693 = vmatpush.msra.mxu3 %v610_v6  ;;  %v503_v42 = vpop.permute.xlu0 %502  ;;  %v721_v1 = vld [vmem:[%s2497_s6 + $0x8] sm:$0xff] }
 0x13e   : > { %v468_v10 = vpop.permute.xlu1 %467 }
 0x13f   : > { %v474_v22 = vsel %vm473_vm9, %v468_v10, %v470_v14  ;;  %v475_v17 = vsel %vm473_vm9, %v470_v14, %v468_v10 }
 0x140   : > { %v478_v27 = vmul.f32 %v1843_v15, %v475_v17  ;;  %v479_v29 = vmul.f32 %v1846_v16, %v474_v22 }
 0x141   : > { %731 = vperm.xlu2 %1473, %v721_v1  }
 0x142   : > { %v598_v49 = vsel %vm597_vm3, %v478_v27, %v563_v38  ;;  %v599_v50 = vsel %vm597_vm3, %v479_v29, %v564_v41 }
 0x143   : > { %v600_v57 = vsel %vm410_vm0, %v598_v49, %v569_v53  ;;  %v601_v58 = vsel %vm410_vm0, %v599_v50, %v570_v54  ;;  %v716_v50 = vld [vmem:[%s2496_s5] sm:$0xff]  ;;  %v717_v53 = vld [vmem:[%s2496_s5 + $0x8] sm:$0xff]  ;;  %v718_v54 = vld [vmem:[%s2496_s5 + $0x10] sm:$0xff] }
 0x145   : > { %v624_v22 = vpop.permute.xlu0 %623 }
 0x146   : > { %v505_v28 = vpop.permute.xlu1 %504 }
 0x147   : > { %v507_v32 = vsel %vm506_vm11, %v503_v42, %v505_v28  ;;  %v508_v44 = vsel %vm506_vm11, %v505_v28, %v503_v42 }
 0x148   : > { %v511_v47 = vmul.f32 %v1870_v30, %v508_v44  ;;  %v512_v48 = vmul.f32 %v1873_v35, %v507_v32 }
 0x14a   : > { %v575_v55 = vrot.slane %v511_v47, 2  ;;  %v576_v56 = vrot.slane %v512_v48, 2 }
 0x14c   : > { %v603_v60 = vsel %vm602_vm7, %v600_v57, %v575_v55  ;;  %v604_v61 = vsel %vm602_vm7, %v601_v58, %v576_v56  ;;  %v719_v55 = vld [vmem:[%s2496_s5 + $0x18] sm:$0xff] }
 0x14d   : > { %665 = vmatpush.msrb.mxu2 %v603_v60  ;;  %694 = vmatpush.msra.mxu3 %v604_v61  ;;  %v1944_v56 = vpop.permute.xlu0 %741 }
 0x14e   : > { %1401 = vmatmul.msk.f32.vlgmr.msra.gmra.mxu3 %vm631_vm12, %v459_v59  ;;  %1396 = vmatmul.msk.f32.vlgmr.msrb.gmra.mxu2 %vm631_vm12, %v459_v59 }
 0x155   : > { %v727_v57 = vpop.permute.xlu0 %726 }
 0x156   : > { %1402 = vmatmul.msk.f32.gmra.mxu3 %vm631_vm12, %v460_v0  ;;  %1397 = vmatmul.msk.f32.gmra.mxu2 %vm631_vm12, %v460_v0 }
 0x15e   : > { %1398 = vmatmul.msk.f32.gmra.mxu2 %vm631_vm12, %v461_v2  ;;  %1403 = vmatmul.msk.f32.gmra.mxu3 %vm631_vm12, %v461_v2 }
 0x166   : > { %1399 = vmatmul.msk.f32.gmra.mxu2 %vm631_vm12, %v462_v3  ;;  %1404 = vmatmul.msk.f32.gmra.mxu3 %vm631_vm12, %v462_v3 }
 0x18b   : > { %v629_v12 = vpop.permute.xlu2 %628 }
 0x193   : > { %v614_v36 = vpop.permute.xlu2 %613 }
 0x19b   : > { %v732_v1 = vpop.permute.xlu2 %731 }
 0x1a4   : > { %v619_v17 = vpop.permute.xlu1 %618 }
 0x1d1   : > { %v667_v4 = vpop.f32.mrf.mxu2  ;;  %v696_v5 = vpop.f32.mrf.mxu3 }
 0x1d2   : > { %v668_v28 = vadd.f32 %v667_v4, %v614_v36  ;;  %v697_v43 = vadd.f32 %v696_v5, %v614_v36 }
 0x1d4   : > { %v708_v48 = vmax.f32 %v668_v28, 0.0  ;;  %v709_v49 = vmax.f32 %v697_v43, 0.0 }
 0x1d9   : > { %v670_v6 = vpop.f32.mrf.mxu2  ;;  %v699_v10 = vpop.f32.mrf.mxu3 }
 0x1da   : > { %v671_v37 = vadd.f32 %v670_v6, %v619_v17  ;;  %v700_v38 = vadd.f32 %v699_v10, %v619_v17 }
 0x1dc   : > { %v710_v44 = vmax.f32 %v671_v37, 0.0  ;;  %v711_v47 = vmax.f32 %v700_v38, 0.0 }
 0x1e1   : > { %v673_v13 = vpop.f32.mrf.mxu2  ;;  %v702_v14 = vpop.f32.mrf.mxu3 }
 0x1e2   : > { %v674_v25 = vadd.f32 %v673_v13, %v624_v22  ;;  %v703_v26 = vadd.f32 %v702_v14, %v624_v22  ;;  %v737_v13 = vpop.permute.xlu1 %736 }
 0x1e4   : > { %v712_v31 = vmax.f32 %v674_v25, 0.0  ;;  %v713_v32 = vmax.f32 %v703_v26, 0.0 }
 0x1e9   : > { %v676_v19 = vpop.f32.mrf.mxu2  ;;  %v705_v24 = vpop.f32.mrf.mxu3 }
 0x1ea   : > { %v706_v27 = vadd.f32 %v705_v24, %v629_v12  ;;  %v677_v29 = vadd.f32 %v676_v19, %v629_v12 }
 0x1ec   : > { %v715_v41 = vmax.f32 %v706_v27, 0.0  ;;  %v714_v42 = vmax.f32 %v677_v29, 0.0 }
 0x1ee   : > { %769 = vmatpush.msra.mxu0 %v714_v42  ;;  %798 = vmatpush.msrb.mxu1 %v715_v41 }
 0x1f0   : > { %770 = vmatpush.msra.mxu0 %v712_v31  ;;  %799 = vmatpush.msrb.mxu1 %v713_v32 }
 0x1f2   : > { %771 = vmatpush.msra.mxu0 %v710_v44  ;;  %800 = vmatpush.msrb.mxu1 %v711_v47 }
 0x1f4   : > { %772 = vmatpush.msra.mxu0 %v708_v48  ;;  %801 = vmatpush.msrb.mxu1 %v709_v49 }
 0x1f5   : > { %1405 = vmatmul.msk.f32.vlgmr.msra.gmra.mxu0 %vm744_vm13, %v716_v50  ;;  %1409 = vmatmul.msk.f32.vlgmr.msrb.gmra.mxu1 %vm744_vm13, %v716_v50 }
 0x1fd   : > { %1406 = vmatmul.msk.f32.gmra.mxu0 %vm744_vm13, %v717_v53  ;;  %1410 = vmatmul.msk.f32.gmra.mxu1 %vm744_vm13, %v717_v53 }
 0x205   : > { %1407 = vmatmul.msk.f32.gmra.mxu0 %vm744_vm13, %v718_v54  ;;  %1411 = vmatmul.msk.f32.gmra.mxu1 %vm744_vm13, %v718_v54 }
 0x20d   : > { %1408 = vmatmul.msk.f32.gmra.mxu0 %vm744_vm13, %v719_v55  ;;  %1412 = vmatmul.msk.f32.gmra.mxu1 %vm744_vm13, %v719_v55 }
 0x272   : > { %v774_v58 = vpop.f32.mrf.mxu0  ;;  %v803_v59 = vpop.f32.mrf.mxu1 }
 0x273   : > { %v775_v60 = vadd.f32 %v774_v58, %v727_v57  ;;  %v804_v61 = vadd.f32 %v803_v59, %v727_v57 }
 0x275   : > { %v1946_v62 = vmax.f32 %v775_v60, 0.0  ;;  %v1948_v63 = vmax.f32 %v804_v61, 0.0 }
 0x277   : > { %2552 = vst [vmem:[#allocation10_spill] sm:$0xff] %v1946_v62  ;;  %930 = vrot.lane.b32.xlu2 %v1948_v63, %s1563_s25  ;;  %1034 = vrot.lane.b32.xlu1 %v1948_v63, %s2554_s16 }
 0x278   : > { %2553 = vst [vmem:[#allocation11_spill] sm:$0xff] %v1948_v63  ;;  %1026 = vrot.lane.b32.xlu0 %v1946_v62, %s2554_s16 }
 0x27a   : > { %v806_v0 = vpop.f32.mrf.mxu1  ;;  %v777_v4 = vpop.f32.mrf.mxu0 }
 0x27b   : > { %v807_v2 = vadd.f32 %v806_v0, %v732_v1  ;;  %v778_v5 = vadd.f32 %v777_v4, %v732_v1 }
 0x27d   : > { %v1968_v3 = vmax.f32 %v807_v2, 0.0  ;;  %v1982_v6 = vmax.f32 %v778_v5, 0.0 }
 0x27f   : > { %1002 = vrot.lane.b32.xlu2 %v1948_v63, %s2555_s24  ;;  %922 = vrot.lane.b32.xlu1 %v1946_v62, %s1563_s25  ;;  %2558 = vst [vmem:[#allocation12_spill] sm:$0xff] %v1968_v3 }
 0x280   : > { %898 = vrot.lane.b32.xlu0 %v1948_v63, %s2556_s30  ;;  %2561 = vst [vmem:[#allocation13_spill] sm:$0xff] %v1982_v6 }
 0x282   : > { %v809_v10 = vpop.f32.mrf.mxu1  ;;  %v780_v12 = vpop.f32.mrf.mxu0 }
 0x283   : > { %v810_v14 = vadd.f32 %v809_v10, %v737_v13  ;;  %v781_v22 = vadd.f32 %v780_v12, %v737_v13 }
 0x285   : > { %v2008_v17 = vmax.f32 %v810_v14, 0.0  ;;  %v2010_v19 = vmax.f32 %v781_v22, 0.0 }
 0x287   : > { %890 = vrot.lane.b32.xlu2 %v1946_v62, %s2556_s30  ;;  %994 = vrot.lane.b32.xlu1 %v1946_v62, %s2555_s24  ;;  %2562 = vst [vmem:[#allocation14_spill] sm:$0xff] %v2008_v17 }
 0x288   : > { %970 = vrot.lane.b32.xlu0 %v1948_v63, %s2557_s14 }
 0x28a   : > { %v812_v25 = vpop.f32.mrf.mxu1  ;;  %v783_v37 = vpop.f32.mrf.mxu0 }
 0x28b   : > { %v813_v26 = vadd.f32 %v812_v25, %v1944_v56  ;;  %v784_v38 = vadd.f32 %v783_v37, %v1944_v56 }
 0x28d   : > { %v2037_v29 = vmax.f32 %v813_v26, 0.0  ;;  %v2060_v32 = vmax.f32 %v784_v38, 0.0 }
 0x28f   : > { %962 = vrot.lane.b32.xlu2 %v1946_v62, %s2557_s14  ;;  %932 = vrot.lane.b32.xlu1 %v1968_v3, %s1563_s25 }
 0x290   : > { %866 = vrot.lane.b32.xlu0 %v1948_v63, %s2559_s15 }
 0x297   : > { %858 = vrot.lane.b32.xlu2 %v1946_v62, %s2559_s15  ;;  %1004 = vrot.lane.b32.xlu1 %v1968_v3, %s2555_s24 }
 0x298   : > { %834 = vrot.lane.b32.xlu0 %v1948_v63, %s2560_s13 }
 0x29f   : > { %826 = vrot.lane.b32.xlu2 %v1946_v62, %s2560_s13  ;;  %892 = vrot.lane.b32.xlu1 %v1982_v6, %s2556_s30 }
 0x2a0   : > { %1036 = vrot.lane.b32.xlu0 %v1968_v3, %s2554_s16 }
 0x2a7   : > { %1028 = vrot.lane.b32.xlu2 %v1982_v6, %s2554_s16  ;;  %964 = vrot.lane.b32.xlu1 %v1982_v6, %s2557_s14 }
 0x2a8   : > { %924 = vrot.lane.b32.xlu0 %v1982_v6, %s1563_s25 }
 0x2af   : > { %900 = vrot.lane.b32.xlu2 %v1968_v3, %s2556_s30  ;;  %868 = vrot.lane.b32.xlu1 %v1968_v3, %s2559_s15 }
 0x2b0   : > { %996 = vrot.lane.b32.xlu0 %v1982_v6, %s2555_s24 }
 0x2b7   : > { %972 = vrot.lane.b32.xlu2 %v1968_v3, %s2557_s14  ;;  %828 = vrot.lane.b32.xlu1 %v1982_v6, %s2560_s13 }
 0x2b8   : > { %860 = vrot.lane.b32.xlu0 %v1982_v6, %s2559_s15 }
 0x2bf   : > { %836 = vrot.lane.b32.xlu2 %v1968_v3, %s2560_s13  ;;  %1038 = vrot.lane.b32.xlu1 %v2008_v17, %s2554_s16 }
 0x2c0   : > { %1030 = vrot.lane.b32.xlu0 %v2010_v19, %s2554_s16 }
 0x2c7   : > { %926 = vrot.lane.b32.xlu2 %v2010_v19, %s1563_s25  ;;  %902 = vrot.lane.b32.xlu1 %v2008_v17, %s2556_s30 }
 0x2c8   : > { %934 = vrot.lane.b32.xlu0 %v2008_v17, %s1563_s25 }
 0x2cf   : > { %998 = vrot.lane.b32.xlu2 %v2010_v19, %s2555_s24  ;;  %974 = vrot.lane.b32.xlu1 %v2008_v17, %s2557_s14 }
 0x2d0   : > { %1006 = vrot.lane.b32.xlu0 %v2008_v17, %s2555_s24 }
 0x2d1   : > { %v931_v24 = vpop.permute.xlu2 %930 }
 0x2d7   : > { %870 = vrot.lane.b32.xlu2 %v2008_v17, %s2559_s15  ;;  %862 = vrot.lane.b32.xlu1 %v2010_v19, %s2559_s15 }
 0x2d8   : > { %894 = vrot.lane.b32.xlu0 %v2010_v19, %s2556_s30 }
 0x2d9   : > { %v1003_v27 = vpop.permute.xlu2 %1002 }
 0x2df   : > { %1040 = vrot.lane.b32.xlu2 %v2037_v29, %s2554_s16  ;;  %838 = vrot.lane.b32.xlu1 %v2008_v17, %s2560_s13 }
 0x2e0   : > { %966 = vrot.lane.b32.xlu0 %v2010_v19, %s2557_s14 }
 0x2e1   : > { %v891_v36 = vpop.permute.xlu2 %890 }
 0x2e7   : > { %936 = vrot.lane.b32.xlu2 %v2037_v29, %s1563_s25  ;;  %1070 = vrot.lane.b32.xlu1 %v2008_v17, %s2563_s22 }
 0x2e8   : > { %830 = vrot.lane.b32.xlu0 %v2010_v19, %s2560_s13 }
 0x2e9   : > { %v1035_v41 = vpop.permute.xlu1 %1034  ;;  %v963_v42 = vpop.permute.xlu2 %962 }
 0x2ea   : > { %v1027_v28 = vpop.permute.xlu0 %1026 }
 0x2eb   : > { %v2054_v43 = vsel %vm543_vm6, %v1027_v28, %v1035_v41  ;;  %v2058_v31 = vsel %vm543_vm6, %v1035_v41, %v1027_v28 }
 0x2ef   : > { %1008 = vrot.lane.b32.xlu2 %v2037_v29, %s2555_s24  ;;  %1032 = vrot.lane.b32.xlu1 %v2060_v32, %s2554_s16  ;;  %s1421_s16 = sshll.u32 %s1645_s21, 3  ;;  %s1511_s21 = scalar_lea.hbm %s2501_s10, 16 }
 0x2f0   : > { %1062 = vrot.lane.b32.xlu0 %v2010_v19, %s2563_s22 }
 0x2f1   : > { %v859_v44 = vpop.permute.xlu2 %858  ;;  %v923_v47 = vpop.permute.xlu1 %922 }
 0x2f2   : > { %v2070_v48 = vsel %vm506_vm11, %v923_v47, %v931_v24  ;;  %v2074_v49 = vsel %vm506_vm11, %v931_v24, %v923_v47  ;;  %v899_v50 = vpop.permute.xlu0 %898 }
 0x2f3   : > { %v2078_v53 = vsel %vm495_vm10, %v891_v36, %v899_v50  ;;  %v2082_v54 = vsel %vm495_vm10, %v899_v50, %v891_v36 }
 0x2f7   : > { %896 = vrot.lane.b32.xlu2 %v2060_v32, %s2556_s30  ;;  %928 = vrot.lane.b32.xlu1 %v2060_v32, %s1563_s25 }
 0x2f8   : > { %904 = vrot.lane.b32.xlu0 %v2037_v29, %s2556_s30 }
 0x2f9   : > { %v827_v55 = vpop.permute.xlu2 %826  ;;  %v995_v56 = vpop.permute.xlu1 %994 }
 0x2fa   : > { %v2092_v57 = vsel %vm532_vm5, %v995_v56, %v1003_v27  ;;  %v2096_v58 = vsel %vm532_vm5, %v1003_v27, %v995_v56  ;;  %v971_v59 = vpop.permute.xlu0 %970 }
 0x2fb   : > { %v2100_v60 = vsel %vm521_vm4, %v963_v42, %v971_v59  ;;  %v2104_v61 = vsel %vm521_vm4, %v971_v59, %v963_v42 }
 0x2ff   : > { %968 = vrot.lane.b32.xlu2 %v2060_v32, %s2557_s14  ;;  %1000 = vrot.lane.b32.xlu1 %v2060_v32, %s2555_s24 }
 0x300   : > { %976 = vrot.lane.b32.xlu0 %v2037_v29, %s2557_s14  ;;  %s1298_s14 = scalar_lea.hbm %s2501_s10, %s1421_s16 }
 0x301   : > { %v1029_v0 = vpop.permute.xlu2 %1028  ;;  %v933_v1 = vpop.permute.xlu1 %932 }
 0x302   : > { %v867_v2 = vpop.permute.xlu0 %866 }
 0x303   : > { %v2114_v4 = vsel %vm484_vm8, %v859_v44, %v867_v2  ;;  %v2118_v5 = vsel %vm484_vm8, %v867_v2, %v859_v44 }
 0x304   : > { %2564 = vst [vmem:[#allocation15_spill] sm:$0xff] %v2114_v4 }
 0x305   : > { %2565 = vst [vmem:[#allocation16_spill] sm:$0xff] %v2118_v5 }
 0x307   : > { %840 = vrot.lane.b32.xlu2 %v2037_v29, %s2560_s13  ;;  %1060 = vrot.lane.b32.xlu1 %v1982_v6, %s2563_s22 }
 0x308   : > { %864 = vrot.lane.b32.xlu0 %v2060_v32, %s2559_s15 }
 0x309   : > { %v901_v10 = vpop.permute.xlu2 %900  ;;  %v1005_v12 = vpop.permute.xlu1 %1004 }
 0x30a   : > { %v835_v13 = vpop.permute.xlu0 %834 }
 0x30b   : > { %v2128_v14 = vsel %vm473_vm9, %v827_v55, %v835_v13  ;;  %v2132_v22 = vsel %vm473_vm9, %v835_v13, %v827_v55  ;;  %v825_v55 = vld [vmem:[%s2499_s8] sm:$0xf] }
 0x30c   : > { %2566 = vst [vmem:[#allocation17_spill] sm:$0xff] %v2128_v14 }
 0x30d   : > { %2567 = vst [vmem:[#allocation18_spill] sm:$0xff] %v2132_v22 }
 0x30f   : > { %1064 = vrot.lane.b32.xlu2 %v2060_v32, %s2563_s22  ;;  %872 = vrot.lane.b32.xlu1 %v2037_v29, %s2559_s15 }
 0x310   : > { %1072 = vrot.lane.b32.xlu0 %v2037_v29, %s2563_s22 }
 0x311   : > { %v893_v24 = vpop.permute.xlu1 %892  ;;  %v973_v36 = vpop.permute.xlu2 %972 }
 0x312   : > { %v2142_v25 = vsel %vm495_vm10, %v893_v24, %v901_v10  ;;  %v2146_v26 = vsel %vm495_vm10, %v901_v10, %v893_v24  ;;  %v1037_v27 = vpop.permute.xlu0 %1036 }
 0x313   : > { %v1043_v37 = vsel %vm543_vm6, %v1029_v0, %v1037_v27  ;;  %v1047_v38 = vsel %vm543_vm6, %v1037_v27, %v1029_v0 }
 0x317   : > { %1068 = vrot.lane.b32.xlu2 %v1968_v3, %s2563_s22  ;;  %832 = vrot.lane.b32.xlu1 %v2060_v32, %s2560_s13  ;;  %s1302_s13 = sshll.u32 %s1298_s14, 4  ;;  %s1303_s13 = int_to_ptr.hbm [resolvable:$true] %s1302_s13 }
 0x318   : > { %1058 = vrot.lane.b32.xlu0 %v1946_v62, %s2563_s22  ;;  %s1505_s1 = sshra.s32 %s1303_s13, 4  ;;  %s1506_s1 = int_to_ptr.hbm [resolvable:$true] %s1505_s1 }
 0x319   : > { %v965_v41 = vpop.permute.xlu1 %964  ;;  %v837_v56 = vpop.permute.xlu2 %836  ;;  %s1507_s2 = scalar_lea.hbm %s1506_s1, 8  ;;  %p1512_p0 = scmp.lt.s32.totalorder %s1506_s1, %s2501_s10 }
 0x31a   : > { %v2160_v42 = vsel %vm521_vm4, %v965_v41, %v973_v36  ;;  %v2164_v28 = vsel %vm521_vm4, %v973_v36, %v965_v41  ;;  %v925_v44 = vpop.permute.xlu0 %924  ;;  %p1508_p11 = scmp.ne.s32.totalorder %s1506_s1, %s1507_s2  ;;  %p1513_p1 = scmp.lt.s32.totalorder %s1511_s21, %s1507_s2 }
 0x31b   : > { %v2168_v47 = vsel %vm506_vm11, %v925_v44, %v933_v1  ;;  %v2172_v50 = vsel %vm506_vm11, %v933_v1, %v925_v44 }
 0x31c   : > { %p1509_p12 = pnand %p1508_p11, %p1662_p5  ;;  %p1514_p2 = por %p1513_p1, %p1512_p0 }
 0x31e   : > { %p1510_p13 = pneg %p1509_p12 }
 0x31f   : > { %1092 = vperm.xlu2 %1473, %v825_v55   ;;  %1066 = vrot.lane.b32.xlu1 %v1948_v63, %s2563_s22  ;;  %s378_s22 = sand.u32 1, %s1545_s18  }
 0x320   : > { %s1388_s25 = sshll.u32 %s378_s22, 3  ;;  %s1284_s0 = scalar_lea.sflag [#allocation3], %s378_s22 }
 0x321   : > { %v869_v59 = vpop.permute.xlu1 %868  ;;  %v927_v1 = vpop.permute.xlu2 %926  ;;  %s380_s29 = scalar_lea.vmem [#allocation2], %s1388_s25  ;;  %p1515_p3 = pnand %p1514_p2, %p1510_p13 }
 0x322   : > { %v997_v0 = vpop.permute.xlu0 %996  ;;  %s1300_s15 = sshll.u32 %s380_s29, 4  ;;  %s1301_s15 = int_to_ptr.vmem [resolvable:$true] %s1300_s15 }
 0x323   : > { %v2181_v2 = vsel %vm532_vm5, %v997_v0, %v1005_v12  ;;  %v2185_v10 = vsel %vm532_vm5, %v1005_v12, %v997_v0 }
 0x329   : > { %v829_v13 = vpop.permute.xlu1 %828  ;;  %v2203_v12 = vpop.permute.xlu2 %998 }
 0x32a   : > { %v2189_v24 = vsel %vm473_vm9, %v829_v13, %v837_v56  ;;  %v2193_v27 = vsel %vm473_vm9, %v837_v56, %v829_v13  ;;  %v861_v36 = vpop.permute.xlu0 %860 }
 0x32b   : > { %2568 = vst [vmem:[#allocation19_spill] sm:$0xff] %v2189_v24  ;;  %v2197_v41 = vsel %vm484_vm8, %v861_v36, %v869_v59  ;;  %v2201_v44 = vsel %vm484_vm8, %v869_v59, %v861_v36 }
 0x32c   : > { %2569 = vst [vmem:[#allocation20_spill] sm:$0xff] %v2193_v27 }
 0x32d   : > { %2570 = vst [vmem:[#allocation21_spill] sm:$0xff] %v2197_v41 }
 0x32e   : > { %2571 = vst [vmem:[#allocation22_spill] sm:$0xff] %v2201_v44 }
 0x331   : > { %v1039_v55 = vpop.permute.xlu1 %1038  ;;  %v2207_v14 = vpop.permute.xlu2 %870 }
 0x332   : > { %v1031_v0 = vpop.permute.xlu0 %1030 }
 0x333   : > { %v1044_v4 = vsel %vm543_vm6, %v1031_v0, %v1039_v55  ;;  %v1048_v3 = vsel %vm543_vm6, %v1039_v55, %v1031_v0  ;;  %v1053_v55 = vmul.f32 %v1047_v38, %v1807_v52  ;;  %v1052_v0 = vmul.f32 %v1043_v37, %v1804_v51 }
 0x334   : > { %v1055_v17 = vmul.f32 %v1048_v3, %v1807_v52  ;;  %v1054_v62 = vmul.f32 %v1044_v4, %v1804_v51  ;;  %v948_v38 = vmul.f32 %v2172_v50, %v1870_v30 }
 0x339   : > { %v2205_v9 = vpop.permute.xlu1 %902  ;;  %v1041_v22 = vpop.permute.xlu2 %1040 }
 0x33a   : > { %v935_v11 = vpop.permute.xlu0 %934 }
 0x33b   : > { %v944_v4 = vsel %vm506_vm11, %v935_v11, %v927_v1 }
 0x341   : > { %v2209_v56 = vpop.permute.xlu1 %974  ;;  %v937_v15 = vpop.permute.xlu2 %936 }
 0x342   : > { %v1007_v13 = vpop.permute.xlu0 %1006 }
 0x349   : > { %v2211_v24 = vpop.permute.xlu1 %862  ;;  %v1009_v16 = vpop.permute.xlu2 %1008 }
 0x34a   : > { %v2213_v27 = vpop.permute.xlu0 %894 }
 0x351   : > { %v2215_v59 = vpop.permute.xlu1 %838  ;;  %v897_v63 = vpop.permute.xlu2 %896 }
 0x352   : > { %2572 = vst [vmem:[#allocation23_spill] sm:$0xff] %v2215_v59  ;;  %v2217_v36 = vpop.permute.xlu0 %966 }
 0x359   : > { %v2219_v23 = vpop.permute.xlu1 %1070 }
 0x35a   : > { %2573 = vst [vmem:[#allocation24_spill] sm:$0xff] %v2219_v23  ;;  %v2221_v5 = vpop.permute.xlu0 %830 }
 0x35b   : > { %2574 = vst [vmem:[#allocation25_spill] sm:$0xff] %v2221_v5 }
 0x361   : > { %v1033_v41 = vpop.permute.xlu1 %1032 }
 0x362   : > { %v1045_v6 = vsel %vm543_vm6, %v1033_v41, %v1041_v22  ;;  %v1049_v59 = vsel %vm543_vm6, %v1041_v22, %v1033_v41  ;;  %v2231_v44 = vpop.permute.xlu0 %1062  ;;  %v1051_v22 = vmul.f32 %v2058_v31, %v1807_v52 }
 0x363   : > { %v1057_v23 = vmul.f32 %v1049_v59, %v1807_v52  ;;  %v1056_v5 = vmul.f32 %v1045_v6, %v1804_v51  ;;  %v1050_v6 = vmul.f32 %v2054_v43, %v1804_v51  ;;  %v969_v43 = vpop.permute.xlu2 %968  ;;  %v1012_v59 = vsel %vm532_vm5, %v2203_v12, %v1007_v13 }
 0x365   : > { %1127 = vmatpush.msrb.mxu3 %v1056_v5  ;;  %1187 = vmatpush.msra.mxu2 %v1057_v23  ;;  %v940_v23 = vsel %vm506_vm11, %v927_v1, %v935_v11  ;;  %v950_v5 = vmul.f32 %v944_v4, %v1870_v30  ;;  %v949_v11 = vmul.f32 %v2168_v47, %v1873_v35 }
 0x366   : > { %v951_v51 = vmul.f32 %v940_v23, %v1873_v35  ;;  %v947_v1 = vmul.f32 %v2070_v48, %v1873_v35 }
 0x367   : > { %1128 = vmatpush.msrb.mxu3 %v1054_v62  ;;  %1188 = vmatpush.msra.mxu2 %v1055_v17 }
 0x369   : > { %v929_v41 = vpop.permute.xlu1 %928  ;;  %1129 = vmatpush.msrb.mxu3 %v1052_v0  ;;  %1189 = vmatpush.msra.mxu2 %v1053_v55  ;;  %v946_v0 = vmul.f32 %v2074_v49, %v1870_v30 }
 0x36a   : > { %v941_v3 = vsel %vm506_vm11, %v929_v41, %v937_v15  ;;  %v945_v62 = vsel %vm506_vm11, %v937_v15, %v929_v41  ;;  %v905_v17 = vpop.permute.xlu0 %904  ;;  %v824_v15 = vld [vmem:[%s2498_s7 + $0x8] sm:$0xf] }
 0x36b   : > { %v953_v52 = vmul.f32 %v941_v3, %v1873_v35  ;;  %1130 = vmatpush.msrb.mxu3 %v1050_v6  ;;  %1190 = vmatpush.msra.mxu2 %v1051_v22  ;;  %v952_v31 = vmul.f32 %v945_v62, %v1870_v30  ;;  %1099 = vst [vmem:[#allocation1 + $0x10] ss:$2 sm:$0xff] %v824_v15  ;;  %v2298_v3 = vpop.permute.xlu2 %840 }
 0x36c   : > { %v909_v37 = vsel %vm495_vm10, %v897_v63, %v905_v17  ;;  %v913_v55 = vsel %vm495_vm10, %v905_v17, %v897_v63  ;;  %v1016_v22 = vsel %vm532_vm5, %v1007_v13, %v2203_v12  ;;  %v908_v35 = vsel %vm495_vm10, %v2213_v27, %v2205_v9 }
 0x36d   : > { %1167 = vmatpush.msra.mxu1 %v953_v52  ;;  %1107 = vmatpush.msrb.mxu0 %v952_v31  ;;  %v912_v30 = vsel %vm495_vm10, %v2205_v9, %v2213_v27  ;;  %v921_v49 = vmul.f32 %v909_v37, %v1852_v20  ;;  %v920_v41 = vmul.f32 %v913_v55, %v1849_v18 }
 0x36e   : > { %v919_v6 = vmul.f32 %v908_v35, %v1852_v20  ;;  %v1023_v23 = vmul.f32 %v1016_v22, %v1786_v40  ;;  %v918_v9 = vmul.f32 %v912_v30, %v1849_v18  ;;  %v917_v27 = vmul.f32 %v2142_v25, %v1852_v20  ;;  %v2578_v22 = vld [vmem:[#allocation22_spill] sm:$0xff]  ;;  %v2581_v30 = vld [vmem:[#allocation15_spill] sm:$0xff] }
 0x36f   : > { %1168 = vmatpush.msra.mxu1 %v951_v51  ;;  %1108 = vmatpush.msrb.mxu0 %v950_v5  ;;  %v1020_v62 = vmul.f32 %v2181_v2, %v1783_v39  ;;  %v1021_v17 = vmul.f32 %v2185_v10, %v1786_v40  ;;  %v916_v52 = vmul.f32 %v2146_v26, %v1849_v18 }
 0x370   : > { %v915_v25 = vmul.f32 %v2078_v53, %v1852_v20  ;;  %v1018_v2 = vmul.f32 %v2092_v57, %v1783_v39  ;;  %v1019_v10 = vmul.f32 %v2096_v58, %v1786_v40  ;;  %v980_v26 = vsel %vm521_vm4, %v2217_v36, %v2209_v56 }
 0x371   : > { %v1001_v47 = vpop.permute.xlu1 %1000  ;;  %1169 = vmatpush.msra.mxu1 %v949_v11  ;;  %1109 = vmatpush.msrb.mxu0 %v948_v38  ;;  %v914_v20 = vmul.f32 %v2082_v54, %v1849_v18  ;;  %v984_v53 = vsel %vm521_vm4, %v2209_v56, %v2217_v36  ;;  %v990_v57 = vmul.f32 %v980_v26, %v1772_v33 }
 0x372   : > { %v1013_v48 = vsel %vm532_vm5, %v1001_v47, %v1009_v16  ;;  %v1017_v63 = vsel %vm532_vm5, %v1009_v16, %v1001_v47  ;;  %v977_v50 = vpop.permute.xlu0 %976  ;;  %v1022_v16 = vmul.f32 %v1012_v59, %v1783_v39  ;;  %v991_v58 = vmul.f32 %v984_v53, %v1775_v34 }
 0x373   : > { %v1025_v12 = vmul.f32 %v1017_v63, %v1786_v40  ;;  %1170 = vmatpush.msra.mxu1 %v947_v1  ;;  %v1024_v13 = vmul.f32 %v1013_v48, %v1783_v39  ;;  %1110 = vmatpush.msrb.mxu0 %v946_v0  ;;  %v981_v4 = vsel %vm521_vm4, %v969_v43, %v977_v50  ;;  %v2336_v56 = vpop.permute.xlu2 %1064  ;;  %v2580_v63 = vld [vmem:[#allocation12_spill] sm:$0xff] }
 0x374   : > { %v985_v31 = vsel %vm521_vm4, %v977_v50, %v969_v43  ;;  %v992_v39 = vmul.f32 %v981_v4, %v1772_v33  ;;  %v988_v18 = vmul.f32 %v2160_v42, %v1772_v33  ;;  %v989_v54 = vmul.f32 %v2164_v28, %v1775_v34 }
 0x375   : > { %1131 = vmatpush.msrb.mxu3 %v1024_v13  ;;  %1171 = vmatpush.msra.mxu1 %v921_v49  ;;  %v993_v40 = vmul.f32 %v985_v31, %v1775_v34  ;;  %v986_v5 = vmul.f32 %v2100_v60, %v1772_v33  ;;  %v987_v15 = vmul.f32 %v2104_v61, %v1775_v34 }
 0x376   : > { %1111 = vmatpush.msrb.mxu0 %v920_v41  ;;  %1191 = vmatpush.msra.mxu2 %v1025_v12  ;;  %v880_v11 = vsel %vm484_vm8, %v2207_v14, %v2211_v24  ;;  %v876_v33 = vsel %vm484_vm8, %v2211_v24, %v2207_v14  ;;  %v960_v61 = vmul.f32 %v2060_v32, %v1795_v45  ;;  %v2575_v24 = vld [vmem:[#allocation10_spill] sm:$0xff]  ;;  %v2582_v12 = vld [vmem:[#allocation21_spill] sm:$0xff] }
 0x377   : > { %1132 = vmatpush.msrb.mxu3 %v1022_v16  ;;  %1172 = vmatpush.msra.mxu1 %v919_v6  ;;  %v961_v37 = vmul.f32 %v2037_v29, %v1798_v46  ;;  %v886_v1 = vmul.f32 %v880_v11, %v1827_v7  ;;  %v958_v14 = vmul.f32 %v2010_v19, %v1795_v45  ;;  %v2576_v32 = vld [vmem:[#allocation14_spill] sm:$0xff]  ;;  %v2577_v29 = vld [vmem:[#allocation11_spill] sm:$0xff]  ;;  %v2579_v19 = vld [vmem:[#allocation13_spill] sm:$0xff] }
 0x378   : > { %1112 = vmatpush.msrb.mxu0 %v918_v9  ;;  %1192 = vmatpush.msra.mxu2 %v1023_v23  ;;  %v954_v59 = vmul.f32 %v2575_v24, %v1795_v45  ;;  %v887_v55 = vmul.f32 %v876_v33, %v1830_v8  ;;  %v959_v47 = vmul.f32 %v2576_v32, %v1798_v46  ;;  %v2583_v6 = vld [vmem:[#allocation23_spill] sm:$0xff]  ;;  %v2584_v16 = vld [vmem:[#allocation25_spill] sm:$0xff]  ;;  %v1100_v33 = vld.sshfl [vmem:[#allocation1] sm:$0xff pattern:$0x75316420] }
 0x379   : > { %v2312_v51 = vpop.permute.xlu1 %1060  ;;  %1133 = vmatpush.msrb.mxu3 %v1020_v62  ;;  %1173 = vmatpush.msra.mxu1 %v917_v27  ;;  %v955_v0 = vmul.f32 %v2577_v29, %v1798_v46  ;;  %v884_v35 = vmul.f32 %v2578_v22, %v1827_v7  ;;  %v956_v48 = vmul.f32 %v2579_v19, %v1795_v45  ;;  %v2586_v27 = vld [vmem:[#allocation24_spill] sm:$0xff] }
 0x37a   : > { %1113 = vmatpush.msrb.mxu0 %v916_v52  ;;  %1193 = vmatpush.msra.mxu2 %v1021_v17  ;;  %v865_v43 = vpop.permute.xlu0 %864  ;;  %v957_v50 = vmul.f32 %v2580_v63, %v1798_v46  ;;  %v883_v49 = vmul.f32 %v2581_v30, %v1830_v8  ;;  %v885_v13 = vmul.f32 %v2582_v12, %v1830_v8  ;;  %v1102_v24 = vld.sshfl [vmem:[#allocation1 + $0x10] sm:$0xff pattern:$0x75316420] }
 0x37b   : > { %1134 = vmatpush.msrb.mxu3 %v1018_v2  ;;  %1174 = vmatpush.msra.mxu1 %v915_v25  ;;  %v844_v45 = vsel %vm473_vm9, %v2584_v16, %v2583_v6  ;;  %v848_v46 = vsel %vm473_vm9, %v2583_v6, %v2584_v16  ;;  %v1080_v62 = vsel %vm554_vm2, %v2586_v27, %v2231_v44  ;;  %v1069_v52 = vpop.permute.xlu2 %1068  ;;  %v2587_v25 = vld [vmem:[#allocation7_spill] sm:$0xff]  ;;  %v2588_v2 = vld [vmem:[#allocation9_spill] sm:$0xff] }
 0x37c   : > { %1114 = vmatpush.msrb.mxu0 %v914_v20  ;;  %1194 = vmatpush.msra.mxu2 %v1019_v10  ;;  %v2589_v10 = vld [vmem:[#allocation8_spill] sm:$0xff]  ;;  %v1101_v20 = vld.sshfl [vmem:[#allocation1 + $0x8] sm:$0xff pattern:$0x75316420]  ;;  %v1079_v53 = vsel %vm554_vm2, %v1069_v52, %v2312_v51 }
 0x37d   : > { %1135 = vmatpush.msrb.mxu3 %v992_v39  ;;  %v855_v39 = vmul.f32 %v844_v45, %v2588_v2 }
 0x37e   : > { %1195 = vmatpush.msra.mxu2 %v993_v40  ;;  %v1489_v40 = vld [vmem:[%s2500_s9 + $0x18] ss:$0 sm:$0xff] }
 0x37f   : > { %1136 = vmatpush.msrb.mxu3 %v990_v57  ;;  %v1085_v57 = vmul.f32 %v1489_v40, %v1079_v53 }
 0x380   : > { %1196 = vmatpush.msra.mxu2 %v991_v58  ;;  %v2590_v58 = vld [vmem:[#allocation20_spill] sm:$0xff] }
 0x381   : > { %v873_v36 = vpop.permute.xlu1 %872  ;;  %1137 = vmatpush.msrb.mxu3 %v988_v18  ;;  %v852_v18 = vmul.f32 %v2590_v58, %v2589_v10 }
 0x382   : > { %v877_v42 = vsel %vm484_vm8, %v865_v43, %v873_v36  ;;  %v881_v28 = vsel %vm484_vm8, %v873_v36, %v865_v43  ;;  %1197 = vmatpush.msra.mxu2 %v989_v54  ;;  %v1073_v38 = vpop.permute.xlu0 %1072  ;;  %v854_v43 = vmul.f32 %v848_v46, %v2589_v10  ;;  %v2591_v54 = vld [vmem:[#allocation19_spill] sm:$0xff] }
 0x383   : > { %v889_v60 = vmul.f32 %v877_v42, %v1830_v8  ;;  %1138 = vmatpush.msrb.mxu3 %v986_v5  ;;  %v888_v34 = vmul.f32 %v881_v28, %v1827_v7  ;;  %v1081_v41 = vsel %vm554_vm2, %v1073_v38, %v2336_v56  ;;  %v2585_v8 = vld [vmem:[#allocation16_spill] sm:$0xff]  ;;  %v853_v36 = vmul.f32 %v2591_v54, %v2588_v2  ;;  %v2592_v42 = vld [vmem:[#allocation18_spill] sm:$0xff] }
 0x384   : > { %1198 = vmatpush.msra.mxu2 %v987_v15  ;;  %v882_v9 = vmul.f32 %v2585_v8, %v1827_v7  ;;  %v1089_v31 = vmul.f32 %v2587_v25, %v1081_v41  ;;  %v1077_v5 = vsel %vm554_vm2, %v2336_v56, %v1073_v38  ;;  %v850_v28 = vmul.f32 %v2592_v42, %v2589_v10 }
 0x385   : > { %1115 = vmatpush.msrb.mxu0 %v888_v34  ;;  %1139 = vmatpush.msrb.mxu3 %v960_v61  ;;  %v1076_v61 = vsel %vm554_vm2, %v2231_v44, %v2586_v27 }
 0x386   : > { %1175 = vmatpush.msra.mxu1 %v889_v60  ;;  %1199 = vmatpush.msra.mxu2 %v961_v37  ;;  %v2593_v60 = vld [vmem:[#allocation17_spill] sm:$0xff]  ;;  %v1490_v37 = vld [vmem:[%s2500_s9 + $0x10] ss:$0 sm:$0xff] }
 0x387   : > { %1116 = vmatpush.msrb.mxu0 %v886_v1  ;;  %1140 = vmatpush.msrb.mxu3 %v958_v14  ;;  %v851_v34 = vmul.f32 %v2593_v60, %v2588_v2  ;;  %v1088_v38 = vmul.f32 %v1490_v37, %v1077_v5  ;;  %v1075_v14 = vsel %vm554_vm2, %v2312_v51, %v1069_v52 }
 0x388   : > { %1176 = vmatpush.msra.mxu1 %v887_v55  ;;  %1200 = vmatpush.msra.mxu2 %v959_v47  ;;  %v1084_v55 = vmul.f32 %v1490_v37, %v1075_v14 }
 0x389   : > { %v833_v23 = vpop.permute.xlu1 %832  ;;  %1117 = vmatpush.msrb.mxu0 %v884_v35  ;;  %1141 = vmatpush.msrb.mxu3 %v956_v48 }
 0x38a   : > { %v845_v17 = vsel %vm473_vm9, %v833_v23, %v2298_v3  ;;  %v849_v4 = vsel %vm473_vm9, %v2298_v3, %v833_v23  ;;  %1177 = vmatpush.msra.mxu1 %v885_v13  ;;  %1201 = vmatpush.msra.mxu2 %v957_v50  ;;  %v1087_v3 = vmul.f32 %v2587_v25, %v1080_v62  ;;  %v1059_v15 = vpop.permute.xlu0 %1058  ;;  %v2595_v25 = vld [vmem:[#allocation5_spill] sm:$0xff] }
 0x38b   : > { %v857_v7 = vmul.f32 %v845_v17, %v2588_v2  ;;  %1118 = vmatpush.msrb.mxu0 %v882_v9  ;;  %1142 = vmatpush.msrb.mxu3 %v954_v59  ;;  %v856_v26 = vmul.f32 %v849_v4, %v2589_v10  ;;  %v1086_v59 = vmul.f32 %v1490_v37, %v1076_v61  ;;  %v2594_v4 = vld [vmem:[#allocation6_spill] sm:$0xff] }
 0x38c   : > { %1178 = vmatpush.msra.mxu1 %v883_v49  ;;  %1202 = vmatpush.msra.mxu2 %v955_v0  ;;  %v1093_v0 = vpop.permute.xlu2 %1092 }
 0x38d   : > { %1219 = vmatpush.msra.mxu3 %v1089_v31  ;;  %1119 = vmatpush.msrb.mxu0 %v856_v26 }
 0x38e   : > { %1179 = vmatpush.msra.mxu1 %v857_v7  ;;  %1143 = vmatmul.f32.vlgmr.msrb.gmra.mxu3 %v1101_v20 }
 0x38f   : > { %1220 = vmatpush.msra.mxu3 %v1087_v3  ;;  %1120 = vmatpush.msrb.mxu0 %v854_v43 }
 0x390   : > { %1180 = vmatpush.msra.mxu1 %v855_v39  ;;  %1203 = vmatmul.f32.vlgmr.msra.gmra.mxu2 %v1101_v20 }
 0x391   : > { %1221 = vmatpush.msra.mxu3 %v1085_v57  ;;  %v1067_v11 = vpop.permute.xlu1 %1066  ;;  %1121 = vmatpush.msrb.mxu0 %v852_v18 }
 0x392   : > { %v1078_v56 = vsel %vm554_vm2, %v1067_v11, %v1059_v15  ;;  %1181 = vmatpush.msra.mxu1 %v853_v36  ;;  %v1074_v44 = vsel %vm554_vm2, %v1059_v15, %v1067_v11 }
 0x393   : > { %v1083_v1 = vmul.f32 %v1489_v40, %v1078_v56  ;;  %1122 = vmatpush.msrb.mxu0 %v850_v28  ;;  %v1082_v32 = vmul.f32 %v1490_v37, %v1074_v44 }
 0x394   : > { %1182 = vmatpush.msra.mxu1 %v851_v34  ;;  %1123 = vmatmul.f32.vlgmr.msrb.gmra.mxu0 %v1100_v33 }
 0x395   : > { %1159 = vmatpush.msra.mxu0 %v1088_v38  ;;  %1183 = vmatmul.f32.vlgmr.msra.gmra.mxu1 %v1100_v33 }
 0x396   : > { %1222 = vmatpush.msra.mxu3 %v1083_v1 }
 0x397   : > { %1160 = vmatpush.msra.mxu0 %v1086_v59  ;;  %1414 = vmatmul.msk.f32.vlgmr.msra.gmra.mxu3 %vm744_vm13, %v1102_v24 }
 0x399   : > { %1161 = vmatpush.msra.mxu0 %v1084_v55 }
 0x39b   : > { %1162 = vmatpush.msra.mxu0 %v1082_v32 }
 0x39c   : > { %1413 = vmatmul.msk.f32.vlgmr.msra.gmra.mxu0 %vm744_vm13, %v1102_v24 }
 0x411   : > { %v1124_v51 = vpop.f32.mrf.mxu0  ;;  %v1144_v47 = vpop.f32.mrf.mxu3 }
 0x412   : > { %v1184_v29 = vpop.f32.mrf.mxu1  ;;  %v1125_v22 = vadd.f32 %v1124_v51, %v1093_v0 }
 0x413   : > { %v1185_v35 = vadd.f32 %v1184_v29, %v1093_v0  ;;  %v1204_v19 = vpop.f32.mrf.mxu2 }
 0x414   : > { %v1145_v48 = vadd.f32 %v1144_v47, %v1125_v22 }
 0x415   : > { %v1205_v21 = vadd.f32 %v1204_v19, %v1185_v35 }
 0x419   : > { %v1164_v63 = vpop.f32.mrf.mxu0 }
 0x41a   : > { %v1165_v50 = vadd.f32 %v1164_v63, %v1145_v48  ;;  %v1224_v30 = vpop.f32.mrf.mxu3 }
 0x41b   : > { %v1225_v49 = vadd.f32 %v1224_v30, %v1205_v21 }
 0x41c   : > { %v1227_v12 = vadd.f32 2.0, %v1165_v50  ;;  %v1241_v27 = vrot.slane %v1165_v50, 6 }
 0x41d   : > { %v1228_v13 = vadd.f32 2.0, %v1225_v49  ;;  %v1242_v62 = vrot.slane %v1225_v49, 6 }
 0x41e   : > { %v1229_v41 = vsub.f32 0.0, %v1227_v12  ;;  %v1245_v52 = vadd.f32 %v1241_v27, %v2594_v4 }
 0x41f   : > { %v1230_v6 = vsub.f32 0.0, %v1228_v13  ;;  %v1246_v31 = vadd.f32 %v1242_v62, %v2595_v25 }
 0x420   : > { %v1231_v16 = vmul.f32 1.442695, %v1229_v41 }
 0x421   : > { %v1233_v45 = vmul.f32 1.442695, %v1230_v6 }
 0x422   : > { %1477 = vpow2.f32 %v1231_v16 }
 0x423   : > { %1479 = vpow2.f32 %v1233_v45 }
 0x428   : > { %v1478_v46 = vpop.eup %1477 }
 0x429   : > { %v1480_v23 = vpop.eup %1479  ;;  %v1235_v8 = vadd.f32 1.0, %v1478_v46 }
 0x42a   : > { %v1236_v9 = vadd.f32 1.0, %v1480_v23 }
 0x42b   : > { %1481 = vrcp.f32 %v1235_v8 }
 0x42c   : > { %1483 = vrcp.f32 %v1236_v9 }
 0x42d   : > { %1485 = vlog2.f32 %v1235_v8 }
 0x42e   : > { %1487 = vlog2.f32 %v1236_v9 }
 0x431   : > { %v1482_v17 = vpop.eup %1481 }
 0x432   : > { %v1484_v2 = vpop.eup %1483  ;;  %v1247_v10 = vmul.f32 %v1482_v17, %v1245_v52 }
 0x433   : > { %v1486_v7 = vpop.eup %1485  ;;  %v1248_v26 = vmul.f32 %v1484_v2, %v1246_v31 }
 0x434   : > { %v1488_v20 = vpop.eup %1487  ;;  %v1258_v53 = vmul.f32 0.6931472, %v1486_v7  ;;  %v1249_v58 = vsel %vm597_vm3, %v2594_v4, %v1247_v10 }
 0x435   : > { %v1260_v3 = vmul.f32 0.6931472, %v1488_v20  ;;  %v1250_v43 = vsel %vm597_vm3, %v2595_v25, %v1248_v26 }
 0x436   : > { %v1263_v39 = vrot.slane %v1258_v53, 2  ;;  %v1253_v40 = vrot.slane %v1250_v43, 4 }
 0x437   : > { %v1264_v57 = vrot.slane %v1260_v3, 2 }
 0x438   : > { %v1267_v18 = vsel %vm597_vm3, %v1263_v39, 0.0  ;;  %v1254_v54 = vsel %vm410_vm0, %v1249_v58, %v1253_v40 }
 0x439   : > { %v1268_v36 = vsel %vm597_vm3, %v1264_v57, 0.0  ;;  %1256 = vst [vmem:[%s380_s29] sm:$0xff] %v1254_v54 }
 0x43a   : > { %v1269_v5 = vadd.f32 %v1268_v36, %v1267_v18 }
 0x43c   : > { %1270 = vadd.xlane.f32.xlu0 %v1269_v5 }
 0x43d   : > { %1518 = shalt.err (!%p1515_p3)
}
 0x43e   : > { %1424 = dma.vmem_to_hbm [thread:$0]  (%p1662_p5), %s1301_s15, 128, %s1303_s13, %s1284_s0   ;;  %vm1281_vm14 = vcmask 0  }
 0x43f   : > { %s393_s1 = scalar_lea.vmem %s2502_s11, %s1677_s12 }
 0x4af   : > { %v1271_v15 = vpop.xlane.xlu0 %1270 }
 0x4b0   : > { %v1272_v11 = vrot.slane %v1271_v15, 4 }
 0x4b2   : > { %v1273_v42 = vadd.f32 %v1272_v11, %v1271_v15 }
 0x4b4   : > { %v1274_v28 = vrot.slane %v1273_v42, 2 }
 0x4b6   : > { %v1275_v33 = vadd.f32 %v1274_v28, %v1273_v42 }
 0x4b8   : > { %v1276_v60 = vrot.slane %v1275_v33, 1 }
 0x4ba   : > { %v1277_v34 = vadd.f32 %v1276_v60, %v1275_v33 }
 0x4bc   : > { %1422 = vpush %v1277_v34 }
 0x4ed   : > { %s1423_s3 = spop %1422 }
 0x4ee   : > { %v1279_v61 = vstv %s1423_s3 }
 0x4ef   : > { %v1280_v56 = vsub.f32 0.0, %v1279_v61 }
 0x4f1   : > { %1282 = vst.msk [vmem:[%s393_s1] sm:$0x1] %vm1281_vm14, %v1280_v56 }
 0x4f2 PF: > { %p1430_p4 = scmp.ge.s32.totalorder %s1553_s20, 2  ;;  %s1317_s0 = sand.u32 1, %s1541_s17  }
 0x4f3   : > { %s1318_s2 = scalar_lea.sflag [#allocation3], %s1317_s0 }
 0x4f4   : > { %p1427_p5 = pnand %p1430_p4, %p1666_p6 }
 0x4f6   : > { %p1428_p7 = pneg %p1427_p5 }
 0x4f8   : > { %1536 = dma.done.wait (%p1428_p7), %s1318_s2, 128  }
 0x4f9   : > { %1538 = vsyncadd (%p1428_p7), %s1318_s2, 4294967168  ;;  %p22_p8 = scmp.ge.s32.totalorder %s1649_s23, 4   ;;  %s2596_s17 = smov %s1545_s18 }
 0x4fa   : > { %s2597_s18 = smov %s1549_s19  ;;  %s2598_s19 = smov %s1660_s26 }
 0x4fb   : > { %s2599_s20 = smov %s1649_s23  ;;  %24 = sbr.rel (!%p22_p8) target bundleno = 9 (0x9), region = 108 }
 0x500   :  { %1330 = vsyncpa [#allocation3], 1 }
 0x501   :  { %1332 = vsyncpa [#allocation3 + $0x1], 1 }

</bundles_post_ra>
